<compile_context>
chip_gen: v7x
topology: tpu7x:2x2x1
jax: 0.10.0
libtpu: 0.0.40
codegen_flags: <defaults>
</compile_context>

<pallas_src>
import numpy as np
import jax
import jax.numpy as jnp
from jax.experimental import pallas as pl
from jax.experimental.pallas import tpu as pltpu


# ------------------------- fixed network geometry --------------------------- #
ORDER = 26                       # 26 -> 24 -> 12 -> 10 -> 5 so fc1 sees 16*5*5
C_IN = 3
K = 3
H1 = W1 = ORDER - K + 1          # conv1 output spatial: 24
C1 = 6
P1H, P1W = H1 // 2, W1 // 2      # pool1 output: 12
H2 = W2 = P1H - K + 1            # conv2 output spatial: 10
C2 = 16
P2H, P2W = H2 // 2, W2 // 2      # pool2 output: 5

VMEM_SPEC = pl.BlockSpec(memory_space=pltpu.MemorySpace.VMEM)


# --------------------------------- kernel ----------------------------------- #

def _conv_relu_pool(y, p_ref, w_ref, b_ref, sel_ref, ho, wo, cin, cout):
    """VALID 3x3 conv (+bias) -> ReLU -> 2x2/2 max-pool on the channel-
    interleaved layout y[h, w*cin + c].  One MXU matmul per conv.

    Returns a (ho//2, (wo//2)*cout) value in the same interleaved layout.
    """
    woc = wo * cin
    # im2col: 9 shifted slabs side-by-side along lanes (static slice stores).
    for kh in range(K):
        for kw in range(K):
            t = kh * K + kw
            p_ref[:, t * woc:(t + 1) * woc] = y[kh:kh + ho,
                                                kw * cin:kw * cin + woc]
    o = jnp.dot(p_ref[...], w_ref[...],
                preferred_element_type=jnp.float32) + b_ref[...]   # (ho, wo*cout)
    o = jnp.maximum(o, 0.0)                                        # ReLU
    half = (wo // 2) * cout
    o = jnp.maximum(o[:, :half], o[:, half:])                      # pool along W
    # 0/1 row-selection matmul re-orders rows to (h%2, h//2) ...
    o = jnp.dot(sel_ref[...], o, preferred_element_type=jnp.float32)
    hp = ho // 2
    return jnp.maximum(o[:hp, :], o[hp:, :])                       # pool along H


def net_kernel(x_ref, g_ref,
               w1_ref, b1_ref, s1_ref,
               w2_ref, b2_ref, s2_ref,
               f1w_ref, f1b_ref, f2w_ref, f2b_ref, f3w_ref, f3b_ref,
               o_ref, p1_ref, p2_ref):
    # 1) Hadamard: one matmul against kron(H, I3) keeps the (h, w*c) layout.
    y = jnp.dot(x_ref[...], g_ref[...],
                preferred_element_type=jnp.float32)                # (26, 78)

    # 2) conv1 + relu + pool1 -> (12, 12*6)
    y = _conv_relu_pool(y, p1_ref, w1_ref, b1_ref, s1_ref, H1, W1, C_IN, C1)

    # 3) conv2 + relu + pool2 -> (5, 5*16)
    y = _conv_relu_pool(y, p2_ref, w2_ref, b2_ref, s2_ref, H2, W2, C1, C2)

    # 4) fc1/fc2/fc3.  PyTorch's CHW flatten (x.view(-1, 400)) is folded into
    #    the pre-permuted fc1 weight; the (5,80) activation is consumed row-
    #    block by row-block so no in-kernel reshape is needed.
    row = P2W * C2                                                  # 80
    acc = f1b_ref[...]                                              # (1, 120)
    for h in range(P2H):
        acc = acc + jnp.dot(y[h:h + 1, :],
                            f1w_ref[h * row:(h + 1) * row, :],
                            preferred_element_type=jnp.float32)
    acc = jnp.maximum(acc, 0.0)
    acc = jnp.maximum(jnp.dot(acc, f2w_ref[...],
                              preferred_element_type=jnp.float32) + f2b_ref[...],
                      0.0)
    o_ref[...] = jnp.dot(acc, f3w_ref[...],
                         preferred_element_type=jnp.float32) + f3b_ref[...]


def _fused_forward(x2, pp):
    return pl.pallas_call(
        net_kernel,
        out_shape=jax.ShapeDtypeStruct((1, 10), jnp.float32),
        in_specs=[VMEM_SPEC] * 14,
        out_specs=VMEM_SPEC,
        scratch_shapes=[
            pltpu.VMEM((H1, K * K * W1 * C_IN), jnp.float32),   # (24, 648) im2col
            pltpu.VMEM((H2, K * K * W2 * C1), jnp.float32),     # (10, 540) im2col
        ],
    )(x2, pp["G"], pp["B1"], pp["b1"], pp["S1"],
      pp["B2"], pp["b2"], pp["S2"],
      pp["fc1_w"], pp["fc1_b"], pp["fc2_w"], pp["fc2_b"],
      pp["fc3_w"], pp["fc3_b"])


@jax.jit
def net_forward(x, packed):
    # HWC -> (H, W*C) channel-interleaved 2-D slab (contiguous, free reshape).
    x2 = x.reshape(ORDER, ORDER * C_IN)
    return _fused_forward(x2, packed)


# ------------------- one-time weight repacking (plain numpy) ---------------- #

def expand_conv_weight(w_oihw, hin, win):
    """(Cout,Cin,KH,KW) -> (KH*KW*Wo*Cin, Wo*Cout) block-sparse matrix so that
    conv == im2col_slab @ B in the channel-interleaved layout.  Output columns
    are ordered (w%2, w//2, cout) so the W-pool is a max of two contiguous
    column halves."""
    w = np.asarray(w_oihw, dtype=np.float32)
    cout, cin, kkh, kkw = w.shape
    wo = win - kkw + 1
    wp = wo // 2
    B = np.zeros((kkh * kkw * wo * cin, wo * cout), dtype=np.float32)
    for kh in range(kkh):
        for kw in range(kkw):
            t = kh * kkw + kw
            wtap = w[:, :, kh, kw].T                       # (Cin, Cout)
            for q in range(wo):                            # q == output w
                col = (q % 2) * (wp * cout) + (q // 2) * cout
                row = t * (wo * cin) + q * cin
                B[row:row + cin, col:col + cout] = wtap
    return B


def pool_row_select(ho):
    """0/1 matrix (ho, ho) whose top half selects even rows and bottom half odd
    rows, so the H-pool becomes a max of two contiguous row halves."""
    hp = ho // 2
    s = np.zeros((ho, ho), dtype=np.float32)
    for r in range(hp):
        s[r, 2 * r] = 1.0
        s[hp + r, 2 * r + 1] = 1.0
    return s


def prepare_params(params):
    had = np.asarray(params["had"], np.float32)                       # (26,26)
    g = np.kron(had, np.eye(C_IN, dtype=np.float32))                  # (78,78)

    b1w = expand_conv_weight(params["conv1_w"], ORDER, ORDER)         # (648,144)
    b1b = np.tile(np.asarray(params["conv1_b"], np.float32), W1)[None]
    s1 = pool_row_select(H1)

    b2w = expand_conv_weight(params["conv2_w"], P1H, P1W)             # (540,160)
    b2b = np.tile(np.asarray(params["conv2_b"], np.float32), W2)[None]
    s2 = pool_row_select(H2)

    # fold the CHW flatten into fc1: kernel feeds activations in (h, w*c) order
    f1 = np.asarray(params["fc1_w"], np.float32)
    f1 = f1.reshape(120, C2, P2H, P2W).transpose(0, 2, 3, 1).reshape(120, -1).T

    packed = dict(
        G=g, B1=b1w, b1=b1b, S1=s1, B2=b2w, b2=b2b, S2=s2,
        fc1_w=f1,
        fc1_b=np.asarray(params["fc1_b"], np.float32)[None],
        fc2_w=np.asarray(params["fc2_w"], np.float32).T,
        fc2_b=np.asarray(params["fc2_b"], np.float32)[None],
        fc3_w=np.asarray(params["fc3_w"], np.float32).T,
        fc3_b=np.asarray(params["fc3_b"], np.float32)[None],
    )
    return {k: jnp.asarray(v) for k, v in packed.items()}


# --------------------------- parameter construction ------------------------- #

def creat_hadmard(i, j):
    # literal replica of the reference's 4-bit popcount sign rule
    temp = i & j
    result = 0
    for step in range(4):
        result += (temp >> step) & 1
    return 1 if result % 2 == 0 else -1


def build_hadamard(order):
    # Reference stacks 3 identical copies along the channel dim; one
    # (order, order) float32 matrix applied per channel is equivalent.
    return np.array([[creat_hadmard(i, j) for j in range(order)]
                     for i in range(order)], dtype=np.float32)


# --------------------------- pure-JAX reference ------------------------------ #

def ref_forward(x, params):
    had = params["had"]
    y = jnp.einsum("hwc,wk->hkc", x, had)

    def conv(z, w, b):
        out = jax.lax.conv_general_dilated(
            z[None], jnp.transpose(w, (2, 3, 1, 0)),
            window_strides=(1, 1), padding="VALID",
            dimension_numbers=("NHWC", "HWIO", "NHWC"))[0]
        return out + b[None, None, :]

    def pool(z):
        H, W, C = z.shape
        return jnp.max(jnp.maximum(z, 0.0).reshape(H // 2, 2, W // 2, 2, C),
                       axis=(1, 3))

    y = pool(conv(y, params["conv1_w"], params["conv1_b"]))
    y = pool(conv(y, params["conv2_w"], params["conv2_b"]))
    y = jnp.transpose(y, (2, 0, 1)).reshape(1, -1)
    y = jnp.maximum(y @ params["fc1_w"].T + params["fc1_b"], 0.0)
    y = jnp.maximum(y @ params["fc2_w"].T + params["fc2_b"], 0.0)
    y = y @ params["fc3_w"].T + params["fc3_b"]
    return y


# ----------------------------------- main ------------------------------------ #

if __name__ == "__main__":
    key = jax.random.PRNGKey(0)
    ks = jax.random.split(key, 12)

    def u(k, shape, fan_in):
        bound = 1.0 / float(np.sqrt(fan_in))
        return jax.random.uniform(k, shape, jnp.float32, -bound, bound)

    params = {
        "had":     jnp.asarray(build_hadamard(ORDER)),
        "conv1_w": u(ks[1], (6, 3, 3, 3), 3 * 3 * 3),
        "conv1_b": u(ks[2], (6,), 3 * 3 * 3),
        "conv2_w": u(ks[3], (16, 6, 3, 3), 6 * 3 * 3),
        "conv2_b": u(ks[4], (16,), 6 * 3 * 3),
        "fc1_w":   u(ks[5], (120, 400), 400),
        "fc1_b":   u(ks[6], (120,), 400),
        "fc2_w":   u(ks[7], (84, 120), 120),
        "fc2_b":   u(ks[8], (84,), 120),
        "fc3_w":   u(ks[9], (10, 84), 84),
        "fc3_b":   u(ks[10], (10,), 84),
    }

    x = jax.random.normal(ks[0], (ORDER, ORDER, 3), jnp.float32)

    packed = prepare_params(params)          # one-time numpy repacking

    out = jax.block_until_ready(net_forward(x, packed))
    ref = jax.block_until_ready(ref_forward(x, params))

    assert out.shape == (1, 10), out.shape
    if not np.allclose(np.asarray(out), np.asarray(ref), atol=1e-3, rtol=1e-3):
        raise AssertionError("Pallas output does not match pure-JAX reference")

    print("KERNEL_OK")
</pallas_src>

<mosaic_0001>
module attributes {stable_mosaic.version = 11 : i64} {
  func.func @net_kernel(%arg0: memref<26x78xf32, #tpu.memory_space<vmem>>, %arg1: memref<78x78xf32, #tpu.memory_space<vmem>>, %arg2: memref<648x144xf32, #tpu.memory_space<vmem>>, %arg3: memref<1x144xf32, #tpu.memory_space<vmem>>, %arg4: memref<24x24xf32, #tpu.memory_space<vmem>>, %arg5: memref<540x160xf32, #tpu.memory_space<vmem>>, %arg6: memref<1x160xf32, #tpu.memory_space<vmem>>, %arg7: memref<10x10xf32, #tpu.memory_space<vmem>>, %arg8: memref<400x120xf32, #tpu.memory_space<vmem>>, %arg9: memref<1x120xf32, #tpu.memory_space<vmem>>, %arg10: memref<120x84xf32, #tpu.memory_space<vmem>>, %arg11: memref<1x84xf32, #tpu.memory_space<vmem>>, %arg12: memref<84x10xf32, #tpu.memory_space<vmem>>, %arg13: memref<1x10xf32, #tpu.memory_space<vmem>>, %arg14: memref<1x10xf32, #tpu.memory_space<vmem>>, %arg15: memref<24x648xf32, #tpu.memory_space<vmem>>, %arg16: memref<10x540xf32, #tpu.memory_space<vmem>>) attributes {dimension_semantics = [], scalar_prefetch = 0 : i64, scratch_operands = 2 : i64, tpu.core_type = #tpu.core_type<tc>} {
    %c0 = arith.constant 0 : index
    %c0_0 = arith.constant 0 : index
    %0 = vector.load %arg0[%c0, %c0_0] : memref<26x78xf32, #tpu.memory_space<vmem>>, vector<26x78xf32>
    %c0_1 = arith.constant 0 : index
    %c0_2 = arith.constant 0 : index
    %1 = vector.load %arg1[%c0_1, %c0_2] : memref<78x78xf32, #tpu.memory_space<vmem>>, vector<78x78xf32>
    %cst = arith.constant dense<0.000000e+00> : vector<26x78xf32>
    %2 = tpu.matmul %0, %1, %cst {dimension_numbers = #tpu.dot_dimension_numbers<[1], [0], [0], [1], [0, 0, 1, 1], [], []>} : vector<26x78xf32>, vector<78x78xf32>, vector<26x78xf32> -> vector<26x78xf32>
    %3 = vector.extract_strided_slice %2 {offsets = [0, 0], sizes = [24, 72], strides = [1, 1]} : vector<26x78xf32> to vector<24x72xf32>
    %c0_3 = arith.constant 0 : index
    %c0_4 = arith.constant 0 : index
    %4 = vector.load %arg15[%c0_3, %c0_4] : memref<24x648xf32, #tpu.memory_space<vmem>>, vector<24x72xf32>
    tpu.vector_store %arg15[%c0_3, %c0_4], %3 {strides = array<i32>} : memref<24x648xf32, #tpu.memory_space<vmem>>, vector<24x72xf32>,
    %5 = vector.extract_strided_slice %2 {offsets = [0, 3], sizes = [24, 72], strides = [1, 1]} : vector<26x78xf32> to vector<24x72xf32>
    %c0_5 = arith.constant 0 : index
    %c72 = arith.constant 72 : index
    %6 = vector.load %arg15[%c0_5, %c72] : memref<24x648xf32, #tpu.memory_space<vmem>>, vector<24x72xf32>
    tpu.vector_store %arg15[%c0_5, %c72], %5 {strides = array<i32>} : memref<24x648xf32, #tpu.memory_space<vmem>>, vector<24x72xf32>,
    %7 = vector.extract_strided_slice %2 {offsets = [0, 6], sizes = [24, 72], strides = [1, 1]} : vector<26x78xf32> to vector<24x72xf32>
    %c0_6 = arith.constant 0 : index
    %c144 = arith.constant 144 : index
    %8 = vector.load %arg15[%c0_6, %c144] : memref<24x648xf32, #tpu.memory_space<vmem>>, vector<24x72xf32>
    tpu.vector_store %arg15[%c0_6, %c144], %7 {strides = array<i32>} : memref<24x648xf32, #tpu.memory_space<vmem>>, vector<24x72xf32>,
    %9 = vector.extract_strided_slice %2 {offsets = [1, 0], sizes = [24, 72], strides = [1, 1]} : vector<26x78xf32> to vector<24x72xf32>
    %c0_7 = arith.constant 0 : index
    %c216 = arith.constant 216 : index
    %10 = vector.load %arg15[%c0_7, %c216] : memref<24x648xf32, #tpu.memory_space<vmem>>, vector<24x72xf32>
    tpu.vector_store %arg15[%c0_7, %c216], %9 {strides = array<i32>} : memref<24x648xf32, #tpu.memory_space<vmem>>, vector<24x72xf32>,
    %11 = vector.extract_strided_slice %2 {offsets = [1, 3], sizes = [24, 72], strides = [1, 1]} : vector<26x78xf32> to vector<24x72xf32>
    %c0_8 = arith.constant 0 : index
    %c288 = arith.constant 288 : index
    %12 = vector.load %arg15[%c0_8, %c288] : memref<24x648xf32, #tpu.memory_space<vmem>>, vector<24x72xf32>
    tpu.vector_store %arg15[%c0_8, %c288], %11 {strides = array<i32>} : memref<24x648xf32, #tpu.memory_space<vmem>>, vector<24x72xf32>,
    %13 = vector.extract_strided_slice %2 {offsets = [1, 6], sizes = [24, 72], strides = [1, 1]} : vector<26x78xf32> to vector<24x72xf32>
    %c0_9 = arith.constant 0 : index
    %c360 = arith.constant 360 : index
    %14 = vector.load %arg15[%c0_9, %c360] : memref<24x648xf32, #tpu.memory_space<vmem>>, vector<24x72xf32>
    tpu.vector_store %arg15[%c0_9, %c360], %13 {strides = array<i32>} : memref<24x648xf32, #tpu.memory_space<vmem>>, vector<24x72xf32>,
    %15 = vector.extract_strided_slice %2 {offsets = [2, 0], sizes = [24, 72], strides = [1, 1]} : vector<26x78xf32> to vector<24x72xf32>
    %c0_10 = arith.constant 0 : index
    %c432 = arith.constant 432 : index
    %16 = vector.load %arg15[%c0_10, %c432] : memref<24x648xf32, #tpu.memory_space<vmem>>, vector<24x72xf32>
    tpu.vector_store %arg15[%c0_10, %c432], %15 {strides = array<i32>} : memref<24x648xf32, #tpu.memory_space<vmem>>, vector<24x72xf32>,
    %17 = vector.extract_strided_slice %2 {offsets = [2, 3], sizes = [24, 72], strides = [1, 1]} : vector<26x78xf32> to vector<24x72xf32>
    %c0_11 = arith.constant 0 : index
    %c504 = arith.constant 504 : index
    %18 = vector.load %arg15[%c0_11, %c504] : memref<24x648xf32, #tpu.memory_space<vmem>>, vector<24x72xf32>
    tpu.vector_store %arg15[%c0_11, %c504], %17 {strides = array<i32>} : memref<24x648xf32, #tpu.memory_space<vmem>>, vector<24x72xf32>,
    %19 = vector.extract_strided_slice %2 {offsets = [2, 6], sizes = [24, 72], strides = [1, 1]} : vector<26x78xf32> to vector<24x72xf32>
    %c0_12 = arith.constant 0 : index
    %c576 = arith.constant 576 : index
    %20 = vector.load %arg15[%c0_12, %c576] : memref<24x648xf32, #tpu.memory_space<vmem>>, vector<24x72xf32>
    tpu.vector_store %arg15[%c0_12, %c576], %19 {strides = array<i32>} : memref<24x648xf32, #tpu.memory_space<vmem>>, vector<24x72xf32>,
    %c0_13 = arith.constant 0 : index
    %c0_14 = arith.constant 0 : index
    %21 = vector.load %arg15[%c0_13, %c0_14] : memref<24x648xf32, #tpu.memory_space<vmem>>, vector<24x648xf32>
    %c0_15 = arith.constant 0 : index
    %c0_16 = arith.constant 0 : index
    %22 = vector.load %arg2[%c0_15, %c0_16] : memref<648x144xf32, #tpu.memory_space<vmem>>, vector<648x144xf32>
    %cst_17 = arith.constant dense<0.000000e+00> : vector<24x144xf32>
    %23 = tpu.matmul %21, %22, %cst_17 {dimension_numbers = #tpu.dot_dimension_numbers<[1], [0], [0], [1], [0, 0, 1, 1], [], []>} : vector<24x648xf32>, vector<648x144xf32>, vector<24x144xf32> -> vector<24x144xf32>
    %c0_18 = arith.constant 0 : index
    %c0_19 = arith.constant 0 : index
    %24 = vector.load %arg3[%c0_18, %c0_19] : memref<1x144xf32, #tpu.memory_space<vmem>>, vector<1x144xf32>
    %25 = vector.broadcast %24 : vector<1x144xf32> to vector<24x144xf32>
    %26 = arith.addf %23, %25 : vector<24x144xf32>
    %cst_20 = arith.constant 0.000000e+00 : f32
    %27 = vector.broadcast %cst_20 : f32 to vector<24x144xf32>
    %28 = arith.maximumf %26, %27 : vector<24x144xf32>
    %29 = vector.extract_strided_slice %28 {offsets = [0, 0], sizes = [24, 72], strides = [1, 1]} : vector<24x144xf32> to vector<24x72xf32>
    %30 = vector.extract_strided_slice %28 {offsets = [0, 72], sizes = [24, 72], strides = [1, 1]} : vector<24x144xf32> to vector<24x72xf32>
    %31 = arith.maximumf %29, %30 : vector<24x72xf32>
    %c0_21 = arith.constant 0 : index
    %c0_22 = arith.constant 0 : index
    %32 = vector.load %arg4[%c0_21, %c0_22] : memref<24x24xf32, #tpu.memory_space<vmem>>, vector<24x24xf32>
    %cst_23 = arith.constant dense<0.000000e+00> : vector<24x72xf32>
    %33 = tpu.matmul %32, %31, %cst_23 {dimension_numbers = #tpu.dot_dimension_numbers<[1], [0], [0], [1], [0, 0, 1, 1], [], []>} : vector<24x24xf32>, vector<24x72xf32>, vector<24x72xf32> -> vector<24x72xf32>
    %34 = vector.extract_strided_slice %33 {offsets = [0, 0], sizes = [12, 72], strides = [1, 1]} : vector<24x72xf32> to vector<12x72xf32>
    %35 = vector.extract_strided_slice %33 {offsets = [12, 0], sizes = [12, 72], strides = [1, 1]} : vector<24x72xf32> to vector<12x72xf32>
    %36 = arith.maximumf %34, %35 : vector<12x72xf32>
    %37 = vector.extract_strided_slice %36 {offsets = [0, 0], sizes = [10, 60], strides = [1, 1]} : vector<12x72xf32> to vector<10x60xf32>
    %c0_24 = arith.constant 0 : index
    %c0_25 = arith.constant 0 : index
    %38 = vector.load %arg16[%c0_24, %c0_25] : memref<10x540xf32, #tpu.memory_space<vmem>>, vector<10x60xf32>
    tpu.vector_store %arg16[%c0_24, %c0_25], %37 {strides = array<i32>} : memref<10x540xf32, #tpu.memory_space<vmem>>, vector<10x60xf32>,
    %39 = vector.extract_strided_slice %36 {offsets = [0, 6], sizes = [10, 60], strides = [1, 1]} : vector<12x72xf32> to vector<10x60xf32>
    %c0_26 = arith.constant 0 : index
    %c60 = arith.constant 60 : index
    %40 = vector.load %arg16[%c0_26, %c60] : memref<10x540xf32, #tpu.memory_space<vmem>>, vector<10x60xf32>
    tpu.vector_store %arg16[%c0_26, %c60], %39 {strides = array<i32>} : memref<10x540xf32, #tpu.memory_space<vmem>>, vector<10x60xf32>,
    %41 = vector.extract_strided_slice %36 {offsets = [0, 12], sizes = [10, 60], strides = [1, 1]} : vector<12x72xf32> to vector<10x60xf32>
    %c0_27 = arith.constant 0 : index
    %c120 = arith.constant 120 : index
    %42 = vector.load %arg16[%c0_27, %c120] : memref<10x540xf32, #tpu.memory_space<vmem>>, vector<10x60xf32>
    tpu.vector_store %arg16[%c0_27, %c120], %41 {strides = array<i32>} : memref<10x540xf32, #tpu.memory_space<vmem>>, vector<10x60xf32>,
    %43 = vector.extract_strided_slice %36 {offsets = [1, 0], sizes = [10, 60], strides = [1, 1]} : vector<12x72xf32> to vector<10x60xf32>
    %c0_28 = arith.constant 0 : index
    %c180 = arith.constant 180 : index
    %44 = vector.load %arg16[%c0_28, %c180] : memref<10x540xf32, #tpu.memory_space<vmem>>, vector<10x60xf32>
    tpu.vector_store %arg16[%c0_28, %c180], %43 {strides = array<i32>} : memref<10x540xf32, #tpu.memory_space<vmem>>, vector<10x60xf32>,
    %45 = vector.extract_strided_slice %36 {offsets = [1, 6], sizes = [10, 60], strides = [1, 1]} : vector<12x72xf32> to vector<10x60xf32>
    %c0_29 = arith.constant 0 : index
    %c240 = arith.constant 240 : index
    %46 = vector.load %arg16[%c0_29, %c240] : memref<10x540xf32, #tpu.memory_space<vmem>>, vector<10x60xf32>
    tpu.vector_store %arg16[%c0_29, %c240], %45 {strides = array<i32>} : memref<10x540xf32, #tpu.memory_space<vmem>>, vector<10x60xf32>,
    %47 = vector.extract_strided_slice %36 {offsets = [1, 12], sizes = [10, 60], strides = [1, 1]} : vector<12x72xf32> to vector<10x60xf32>
    %c0_30 = arith.constant 0 : index
    %c300 = arith.constant 300 : index
    %48 = vector.load %arg16[%c0_30, %c300] : memref<10x540xf32, #tpu.memory_space<vmem>>, vector<10x60xf32>
    tpu.vector_store %arg16[%c0_30, %c300], %47 {strides = array<i32>} : memref<10x540xf32, #tpu.memory_space<vmem>>, vector<10x60xf32>,
    %49 = vector.extract_strided_slice %36 {offsets = [2, 0], sizes = [10, 60], strides = [1, 1]} : vector<12x72xf32> to vector<10x60xf32>
    %c0_31 = arith.constant 0 : index
    %c360_32 = arith.constant 360 : index
    %50 = vector.load %arg16[%c0_31, %c360_32] : memref<10x540xf32, #tpu.memory_space<vmem>>, vector<10x60xf32>
    tpu.vector_store %arg16[%c0_31, %c360_32], %49 {strides = array<i32>} : memref<10x540xf32, #tpu.memory_space<vmem>>, vector<10x60xf32>,
    %51 = vector.extract_strided_slice %36 {offsets = [2, 6], sizes = [10, 60], strides = [1, 1]} : vector<12x72xf32> to vector<10x60xf32>
    %c0_33 = arith.constant 0 : index
    %c420 = arith.constant 420 : index
    %52 = vector.load %arg16[%c0_33, %c420] : memref<10x540xf32, #tpu.memory_space<vmem>>, vector<10x60xf32>
    tpu.vector_store %arg16[%c0_33, %c420], %51 {strides = array<i32>} : memref<10x540xf32, #tpu.memory_space<vmem>>, vector<10x60xf32>,
    %53 = vector.extract_strided_slice %36 {offsets = [2, 12], sizes = [10, 60], strides = [1, 1]} : vector<12x72xf32> to vector<10x60xf32>
    %c0_34 = arith.constant 0 : index
    %c480 = arith.constant 480 : index
    %54 = vector.load %arg16[%c0_34, %c480] : memref<10x540xf32, #tpu.memory_space<vmem>>, vector<10x60xf32>
    tpu.vector_store %arg16[%c0_34, %c480], %53 {strides = array<i32>} : memref<10x540xf32, #tpu.memory_space<vmem>>, vector<10x60xf32>,
    %c0_35 = arith.constant 0 : index
    %c0_36 = arith.constant 0 : index
    %55 = vector.load %arg16[%c0_35, %c0_36] : memref<10x540xf32, #tpu.memory_space<vmem>>, vector<10x540xf32>
    %c0_37 = arith.constant 0 : index
    %c0_38 = arith.constant 0 : index
    %56 = vector.load %arg5[%c0_37, %c0_38] : memref<540x160xf32, #tpu.memory_space<vmem>>, vector<540x160xf32>
    %cst_39 = arith.constant dense<0.000000e+00> : vector<10x160xf32>
    %57 = tpu.matmul %55, %56, %cst_39 {dimension_numbers = #tpu.dot_dimension_numbers<[1], [0], [0], [1], [0, 0, 1, 1], [], []>} : vector<10x540xf32>, vector<540x160xf32>, vector<10x160xf32> -> vector<10x160xf32>
    %c0_40 = arith.constant 0 : index
    %c0_41 = arith.constant 0 : index
    %58 = vector.load %arg6[%c0_40, %c0_41] : memref<1x160xf32, #tpu.memory_space<vmem>>, vector<1x160xf32>
    %59 = vector.broadcast %58 : vector<1x160xf32> to vector<10x160xf32>
    %60 = arith.addf %57, %59 : vector<10x160xf32>
    %cst_42 = arith.constant 0.000000e+00 : f32
    %61 = vector.broadcast %cst_42 : f32 to vector<10x160xf32>
    %62 = arith.maximumf %60, %61 : vector<10x160xf32>
    %63 = vector.extract_strided_slice %62 {offsets = [0, 0], sizes = [10, 80], strides = [1, 1]} : vector<10x160xf32> to vector<10x80xf32>
    %64 = vector.extract_strided_slice %62 {offsets = [0, 80], sizes = [10, 80], strides = [1, 1]} : vector<10x160xf32> to vector<10x80xf32>
    %65 = arith.maximumf %63, %64 : vector<10x80xf32>
    %c0_43 = arith.constant 0 : index
    %c0_44 = arith.constant 0 : index
    %66 = vector.load %arg7[%c0_43, %c0_44] : memref<10x10xf32, #tpu.memory_space<vmem>>, vector<10x10xf32>
    %cst_45 = arith.constant dense<0.000000e+00> : vector<10x80xf32>
    %67 = tpu.matmul %66, %65, %cst_45 {dimension_numbers = #tpu.dot_dimension_numbers<[1], [0], [0], [1], [0, 0, 1, 1], [], []>} : vector<10x10xf32>, vector<10x80xf32>, vector<10x80xf32> -> vector<10x80xf32>
    %68 = vector.extract_strided_slice %67 {offsets = [0, 0], sizes = [5, 80], strides = [1, 1]} : vector<10x80xf32> to vector<5x80xf32>
    %69 = vector.extract_strided_slice %67 {offsets = [5, 0], sizes = [5, 80], strides = [1, 1]} : vector<10x80xf32> to vector<5x80xf32>
    %70 = arith.maximumf %68, %69 : vector<5x80xf32>
    %c0_46 = arith.constant 0 : index
    %c0_47 = arith.constant 0 : index
    %71 = vector.load %arg9[%c0_46, %c0_47] : memref<1x120xf32, #tpu.memory_space<vmem>>, vector<1x120xf32>
    %72 = vector.extract_strided_slice %70 {offsets = [0, 0], sizes = [1, 80], strides = [1, 1]} : vector<5x80xf32> to vector<1x80xf32>
    %c0_48 = arith.constant 0 : index
    %c0_49 = arith.constant 0 : index
    %73 = vector.load %arg8[%c0_48, %c0_49] : memref<400x120xf32, #tpu.memory_space<vmem>>, vector<80x120xf32>
    %cst_50 = arith.constant dense<0.000000e+00> : vector<1x120xf32>
    %74 = tpu.matmul %72, %73, %cst_50 {dimension_numbers = #tpu.dot_dimension_numbers<[1], [0], [0], [1], [0, 0, 1, 1], [], []>} : vector<1x80xf32>, vector<80x120xf32>, vector<1x120xf32> -> vector<1x120xf32>
    %75 = arith.addf %71, %74 : vector<1x120xf32>
    %76 = vector.extract_strided_slice %70 {offsets = [1, 0], sizes = [1, 80], strides = [1, 1]} : vector<5x80xf32> to vector<1x80xf32>
    %c80 = arith.constant 80 : index
    %c0_51 = arith.constant 0 : index
    %77 = vector.load %arg8[%c80, %c0_51] : memref<400x120xf32, #tpu.memory_space<vmem>>, vector<80x120xf32>
    %cst_52 = arith.constant dense<0.000000e+00> : vector<1x120xf32>
    %78 = tpu.matmul %76, %77, %cst_52 {dimension_numbers = #tpu.dot_dimension_numbers<[1], [0], [0], [1], [0, 0, 1, 1], [], []>} : vector<1x80xf32>, vector<80x120xf32>, vector<1x120xf32> -> vector<1x120xf32>
    %79 = arith.addf %75, %78 : vector<1x120xf32>
    %80 = vector.extract_strided_slice %70 {offsets = [2, 0], sizes = [1, 80], strides = [1, 1]} : vector<5x80xf32> to vector<1x80xf32>
    %c160 = arith.constant 160 : index
    %c0_53 = arith.constant 0 : index
    %81 = vector.load %arg8[%c160, %c0_53] : memref<400x120xf32, #tpu.memory_space<vmem>>, vector<80x120xf32>
    %cst_54 = arith.constant dense<0.000000e+00> : vector<1x120xf32>
    %82 = tpu.matmul %80, %81, %cst_54 {dimension_numbers = #tpu.dot_dimension_numbers<[1], [0], [0], [1], [0, 0, 1, 1], [], []>} : vector<1x80xf32>, vector<80x120xf32>, vector<1x120xf32> -> vector<1x120xf32>
    %83 = arith.addf %79, %82 : vector<1x120xf32>
    %84 = vector.extract_strided_slice %70 {offsets = [3, 0], sizes = [1, 80], strides = [1, 1]} : vector<5x80xf32> to vector<1x80xf32>
    %c240_55 = arith.constant 240 : index
    %c0_56 = arith.constant 0 : index
    %85 = vector.load %arg8[%c240_55, %c0_56] : memref<400x120xf32, #tpu.memory_space<vmem>>, vector<80x120xf32>
    %cst_57 = arith.constant dense<0.000000e+00> : vector<1x120xf32>
    %86 = tpu.matmul %84, %85, %cst_57 {dimension_numbers = #tpu.dot_dimension_numbers<[1], [0], [0], [1], [0, 0, 1, 1], [], []>} : vector<1x80xf32>, vector<80x120xf32>, vector<1x120xf32> -> vector<1x120xf32>
    %87 = arith.addf %83, %86 : vector<1x120xf32>
    %88 = vector.extract_strided_slice %70 {offsets = [4, 0], sizes = [1, 80], strides = [1, 1]} : vector<5x80xf32> to vector<1x80xf32>
    %c320 = arith.constant 320 : index
    %c0_58 = arith.constant 0 : index
    %89 = vector.load %arg8[%c320, %c0_58] : memref<400x120xf32, #tpu.memory_space<vmem>>, vector<80x120xf32>
    %cst_59 = arith.constant dense<0.000000e+00> : vector<1x120xf32>
    %90 = tpu.matmul %88, %89, %cst_59 {dimension_numbers = #tpu.dot_dimension_numbers<[1], [0], [0], [1], [0, 0, 1, 1], [], []>} : vector<1x80xf32>, vector<80x120xf32>, vector<1x120xf32> -> vector<1x120xf32>
    %91 = arith.addf %87, %90 : vector<1x120xf32>
    %cst_60 = arith.constant 0.000000e+00 : f32
    %92 = vector.broadcast %cst_60 : f32 to vector<1x120xf32>
    %93 = arith.maximumf %91, %92 : vector<1x120xf32>
    %c0_61 = arith.constant 0 : index
    %c0_62 = arith.constant 0 : index
    %94 = vector.load %arg10[%c0_61, %c0_62] : memref<120x84xf32, #tpu.memory_space<vmem>>, vector<120x84xf32>
    %cst_63 = arith.constant dense<0.000000e+00> : vector<1x84xf32>
    %95 = tpu.matmul %93, %94, %cst_63 {dimension_numbers = #tpu.dot_dimension_numbers<[1], [0], [0], [1], [0, 0, 1, 1], [], []>} : vector<1x120xf32>, vector<120x84xf32>, vector<1x84xf32> -> vector<1x84xf32>
    %c0_64 = arith.constant 0 : index
    %c0_65 = arith.constant 0 : index
    %96 = vector.load %arg11[%c0_64, %c0_65] : memref<1x84xf32, #tpu.memory_space<vmem>>, vector<1x84xf32>
    %97 = arith.addf %95, %96 : vector<1x84xf32>
    %cst_66 = arith.constant 0.000000e+00 : f32
    %98 = vector.broadcast %cst_66 : f32 to vector<1x84xf32>
    %99 = arith.maximumf %97, %98 : vector<1x84xf32>
    %c0_67 = arith.constant 0 : index
    %c0_68 = arith.constant 0 : index
    %100 = vector.load %arg12[%c0_67, %c0_68] : memref<84x10xf32, #tpu.memory_space<vmem>>, vector<84x10xf32>
    %cst_69 = arith.constant dense<0.000000e+00> : vector<1x10xf32>
    %101 = tpu.matmul %99, %100, %cst_69 {dimension_numbers = #tpu.dot_dimension_numbers<[1], [0], [0], [1], [0, 0, 1, 1], [], []>} : vector<1x84xf32>, vector<84x10xf32>, vector<1x10xf32> -> vector<1x10xf32>
    %c0_70 = arith.constant 0 : index
    %c0_71 = arith.constant 0 : index
    %102 = vector.load %arg13[%c0_70, %c0_71] : memref<1x10xf32, #tpu.memory_space<vmem>>, vector<1x10xf32>
    %103 = arith.addf %101, %102 : vector<1x10xf32>
    %c0_72 = arith.constant 0 : index
    %c0_73 = arith.constant 0 : index
    %104 = vector.load %arg14[%c0_72, %c0_73] : memref<1x10xf32, #tpu.memory_space<vmem>>, vector<1x10xf32>
    tpu.vector_store %arg14[%c0_72, %c0_73], %103 {strides = array<i32>} : memref<1x10xf32, #tpu.memory_space<vmem>>, vector<1x10xf32>,
    return
  }
}

</mosaic_0001>

<bundles_post_ra>
// kernel: net_forward.1
= control target key start
LH: loop header
LB: loop body
LE: loop exit
PB: predicated region body
PF: predicated region fallthrough
CT: control target
= control target key end

     0   :  { %vm62_vm0 = vcmask 637952   ;;  %s4508_s0 = inlined_call_operand.vmem [shape: f32[26,78], index: 0, kind: input, shape index: {}]   ;;  %s4509_s1 = inlined_call_operand.vmem [shape: f32[78,78], index: 1, kind: input, shape index: {}]   ;;  %s4510_s2 = inlined_call_operand.vmem [shape: f32[648,144], index: 2, kind: input, shape index: {}]   ;;  %s4511_s3 = inlined_call_operand.vmem [shape: f32[1,144], index: 3, kind: input, shape index: {}]   ;;  %s4512_s4 = inlined_call_operand.vmem [shape: f32[24,24], index: 4, kind: input, shape index: {}]   ;;  %s4513_s5 = inlined_call_operand.vmem [shape: f32[540,160], index: 5, kind: input, shape index: {}]   ;;  %s4514_s6 = inlined_call_operand.vmem [shape: f32[1,160], index: 6, kind: input, shape index: {}]   ;;  %s4515_s7 = inlined_call_operand.vmem [shape: f32[10,10], index: 7, kind: input, shape index: {}]   ;;  %s4516_s8 = inlined_call_operand.vmem [shape: f32[400,120], index: 8, kind: input, shape index: {}]   ;;  %s4517_s9 = inlined_call_operand.vmem [shape: f32[1,120], index: 9, kind: input, shape index: {}]   ;;  %s4518_s10 = inlined_call_operand.vmem [shape: f32[120,84], index: 10, kind: input, shape index: {}]   ;;  %s4519_s11 = inlined_call_operand.vmem [shape: f32[1,84], index: 11, kind: input, shape index: {}]   ;;  %s4520_s12 = inlined_call_operand.vmem [shape: f32[84,10], index: 12, kind: input, shape index: {}]   ;;  %s4521_s13 = inlined_call_operand.vmem [shape: f32[1,10], index: 13, kind: input, shape index: {}]   ;;  %s4522_s14 = inlined_call_operand.hbm [shape: f32[1,10], index: 14, kind: output, shape index: {}]  }
   0x1   :  { %v52_v0 = vld [vmem:[%s4509_s1] sm:$0xff]  ;;  %v53_v1 = vld [vmem:[%s4509_s1 + $0x8] sm:$0xff]  ;;  %v54_v2 = vld [vmem:[%s4509_s1 + $0x10] sm:$0xff] }
   0x2   :  { %v2496_v3 = vpack.c.bf16 %v53_v1, %v52_v0  ;;  %v55_v4 = vld [vmem:[%s4509_s1 + $0x18] sm:$0xff]  ;;  %v56_v6 = vld [vmem:[%s4509_s1 + $0x20] sm:$0xff]  ;;  %v57_v7 = vld [vmem:[%s4509_s1 + $0x28] sm:$0xff] }
   0x3   :  { %v2500_v5 = vpack.c.bf16 %v55_v4, %v54_v2  ;;  %v48_v8 = vld [vmem:[%s4508_s0] sm:$0xff]  ;;  %v2504_v9 = vpack.c.bf16 %v57_v7, %v56_v6 }
   0x4   :  { %2497 = vmatprep.subr.bf16.mxu0 %v2496_v3  ;;  %2295 = vmatprep.mubr.msk.f32.mxu0 %vm62_vm0, %v48_v8 }
   0x5   :  { %2499 = vmatpush3.bf16.msra.mxu0 %v2496_v3 }
   0x6   :  { %2501 = vmatprep.subr.bf16.mxu0 %v2500_v5 }
   0x7   :  { %19 = vsyncpa [#allocation5], 0  ;;  %v58_v10 = vld [vmem:[%s4509_s1 + $0x30] sm:$0xff]  ;;  %v59_v11 = vld [vmem:[%s4509_s1 + $0x38] sm:$0xff]  ;;  %vm75_vm1 = vcmask 1045504   ;;  %vm3040_vm2 = vmmov 1  }
   0x8   :  { %v2508_v12 = vpack.c.bf16 %v59_v11, %v58_v10  ;;  %v60_v13 = vld [vmem:[%s4509_s1 + $0x40] sm:$0xff]  ;;  %v61_v14 = vld [vmem:[%s4509_s1 + $0x48] sm:$0x3f]  ;;  %vm2513_vm3 = vmpackc.low %vm75_vm1, %vm3040_vm2  ;;  %vm164_vm4 = vcmask 588800   ;;  %vm202_vm5 = vcmask 1046528   ;;  %s3041_s30 = smov 69  }
   0x9   :  { %2503 = vmatpush3.bf16.msra.mxu0 %v2500_v5  ;;  %v2512_v15 = vpack.c.bf16 %v61_v14, %v60_v13  ;;  %v49_v16 = vld [vmem:[%s4508_s0 + $0x8] sm:$0xff]  ;;  %v50_v17 = vld [vmem:[%s4508_s0 + $0x10] sm:$0xff]  ;;  %v51_v18 = vld [vmem:[%s4508_s0 + $0x18] sm:$0x3]  ;;  %s3042_s15 = smov 88   ;;  %s3043_s0 = smov 10  }
   0xa   :  { %2505 = vmatprep.subr.bf16.mxu0 %v2504_v9  ;;  %v330_v19 = vld [vmem:[%s4510_s2 + $0x8] sm:$0xff]  ;;  %v332_v20 = vld [vmem:[%s4510_s2 + $0x18] sm:$0xff]  ;;  %v329_v21 = vld [vmem:[%s4510_s2] sm:$0xff]  ;;  %s3044_s16 = smov 48   ;;  %s3045_s17 = smov 98   ;;  %vm180_vm6 = vcmask 1048128  }
   0xb   :  { %v2518_v22 = vpack.c.bf16 %v332_v20, %v330_v19  ;;  %v331_v23 = vld [vmem:[%s4510_s2 + $0x10] sm:$0xff]  ;;  %v334_v24 = vld [vmem:[%s4510_s2 + $0x28] sm:$0xff]  ;;  %v336_v25 = vld [vmem:[%s4510_s2 + $0x38] sm:$0xff]  ;;  %s3046_s18 = smov 29   ;;  %s3047_s19 = smov 117   ;;  %vm182_vm7 = vcmask 130048  }
   0xc   :  { %v2520_v26 = vpack.c.bf16 %v331_v23, %v329_v21  ;;  %v2522_v27 = vpack.c.bf16 %v336_v25, %v334_v24  ;;  %v333_v28 = vld [vmem:[%s4510_s2 + $0x20] sm:$0xff]  ;;  %v335_v29 = vld [vmem:[%s4510_s2 + $0x30] sm:$0xff]  ;;  %v338_v30 = vld [vmem:[%s4510_s2 + $0x48] sm:$0xff]  ;;  %s3048_s20 = smov 58   ;;  %vm221_vm8 = vcmask 261120   ;;  %vm197_vm9 = vcmask 720000  }
   0xd   :  { %2507 = vmatpush3.bf16.msra.mxu0 %v2504_v9  ;;  %2519 = vmatprep.subr.bf16.mxu1 %v2518_v22  ;;  %v340_v31 = vld [vmem:[%s4510_s2 + $0x58] sm:$0xff]  ;;  %v2524_v32 = vpack.c.bf16 %v335_v29, %v333_v28  ;;  %v337_v34 = vld [vmem:[%s4510_s2 + $0x40] sm:$0xff]  ;;  %v339_v35 = vld [vmem:[%s4510_s2 + $0x50] sm:$0xff]  ;;  %vm219_vm10 = vcmask 1048256   ;;  %vm251_vm11 = vcmask 392192   ;;  %vm273_vm12 = vcmask 982400  }
   0xe   :  { %2509 = vmatprep.subr.bf16.mxu0 %v2508_v12  ;;  %2521 = vmatpush1.bf16.msra.mxu1 %v2520_v26  ;;  %v2526_v33 = vpack.c.bf16 %v340_v31, %v338_v30  ;;  %v342_v36 = vld [vmem:[%s4510_s2 + $0x68] sm:$0xff]  ;;  %v344_v37 = vld [vmem:[%s4510_s2 + $0x78] sm:$0xff]  ;;  %v2528_v38 = vpack.c.bf16 %v339_v35, %v337_v34  ;;  %v341_v40 = vld [vmem:[%s4510_s2 + $0x60] sm:$0xff]  ;;  %vm236_vm13 = vcmask 851200   ;;  %vm249_vm14 = vcmask 1048384   ;;  %s3055_s26 = smov 54  }
   0xf   :  { %2523 = vmatprep.subr.bf16.mxu1 %v2522_v27  ;;  %v2530_v39 = vpack.c.bf16 %v344_v37, %v342_v36  ;;  %v343_v41 = vld [vmem:[%s4510_s2 + $0x70] sm:$0xff]  ;;  %v346_v42 = vld [vmem:[%s4510_s2 + $0x88] sm:$0xff]  ;;  %v348_v43 = vld [vmem:[%s4510_s2 + $0x98] sm:$0xff]  ;;  %vm286_vm15 = vcmask 1048512   ;;  %s3056_s27 = smov 106   ;;  %s3057_s28 = smov 104  }
  0x10   :  { %v2532_v44 = vpack.c.bf16 %v343_v41, %v341_v40  ;;  %v2534_v45 = vpack.c.bf16 %v348_v43, %v346_v42  ;;  %v345_v46 = vld [vmem:[%s4510_s2 + $0x80] sm:$0xff]  ;;  %v347_v47 = vld [vmem:[%s4510_s2 + $0x90] sm:$0xff]  ;;  %v350_v48 = vld [vmem:[%s4510_s2 + $0xa8] sm:$0xff]  ;;  %s3058_s29 = smov 30  }
  0x11   :  { %2511 = vmatpush3.bf16.msra.mxu0 %v2508_v12  ;;  %v352_v49 = vld [vmem:[%s4510_s2 + $0xb8] sm:$0xff]  ;;  %v2536_v50 = vpack.c.bf16 %v347_v47, %v345_v46  ;;  %v349_v52 = vld [vmem:[%s4510_s2 + $0xa0] sm:$0xff]  ;;  %v351_v53 = vld [vmem:[%s4510_s2 + $0xb0] sm:$0xff] }
  0x12   :  { %2514 = vmatprep.subr.msk.bf16.mxu0 %vm2513_vm3, %v2512_v15  ;;  %2525 = vmatpush1.bf16.msra.mxu1 %v2524_v32  ;;  %v2538_v51 = vpack.c.bf16 %v352_v49, %v350_v48  ;;  %v354_v54 = vld [vmem:[%s4510_s2 + $0xc8] sm:$0xff]  ;;  %v356_v55 = vld [vmem:[%s4510_s2 + $0xd8] sm:$0xff]  ;;  %v2540_v56 = vpack.c.bf16 %v351_v53, %v349_v52  ;;  %v353_v58 = vld [vmem:[%s4510_s2 + $0xc0] sm:$0xff] }
  0x13   :  { %2527 = vmatprep.subr.bf16.mxu1 %v2526_v33  ;;  %v2542_v57 = vpack.c.bf16 %v356_v55, %v354_v54  ;;  %v355_v59 = vld [vmem:[%s4510_s2 + $0xd0] sm:$0xff]  ;;  %v358_v60 = vld [vmem:[%s4510_s2 + $0xe8] sm:$0xff]  ;;  %v360_v61 = vld [vmem:[%s4510_s2 + $0xf8] sm:$0xff] }
  0x14   :  { %v2544_v62 = vpack.c.bf16 %v355_v59, %v353_v58  ;;  %v2546_v63 = vpack.c.bf16 %v360_v61, %v358_v60  ;;  %v357_v0 = vld [vmem:[%s4510_s2 + $0xe0] sm:$0xff]  ;;  %v359_v1 = vld [vmem:[%s4510_s2 + $0xf0] sm:$0xff]  ;;  %v362_v2 = vld [vmem:[%s4510_s2 + $0x108] sm:$0xff] }
  0x15   :  { %2517 = vmatpush3.bf16.msk.msra.mxu0 %vm2513_vm3, %v2512_v15  ;;  %v364_v3 = vld [vmem:[%s4510_s2 + $0x118] sm:$0xff]  ;;  %v2548_v4 = vpack.c.bf16 %v359_v1, %v357_v0  ;;  %v361_v6 = vld [vmem:[%s4510_s2 + $0x100] sm:$0xff]  ;;  %v363_v7 = vld [vmem:[%s4510_s2 + $0x110] sm:$0xff]  ;;  %vm303_vm3 = vcmask 1048064  }
  0x16   :  { %2529 = vmatpush1.bf16.msra.mxu1 %v2528_v38  ;;  %v2550_v5 = vpack.c.bf16 %v364_v3, %v362_v2  ;;  %v366_v8 = vld [vmem:[%s4510_s2 + $0x128] sm:$0xff]  ;;  %v368_v9 = vld [vmem:[%s4510_s2 + $0x138] sm:$0xff]  ;;  %v2552_v10 = vpack.c.bf16 %v363_v7, %v361_v6  ;;  %v365_v12 = vld [vmem:[%s4510_s2 + $0x120] sm:$0xff] }
  0x17   :  { %2531 = vmatprep.subr.bf16.mxu1 %v2530_v39  ;;  %v2554_v11 = vpack.c.bf16 %v368_v9, %v366_v8  ;;  %v367_v13 = vld [vmem:[%s4510_s2 + $0x130] sm:$0xff]  ;;  %v370_v14 = vld [vmem:[%s4510_s2 + $0x148] sm:$0xff]  ;;  %v372_v15 = vld [vmem:[%s4510_s2 + $0x158] sm:$0xff] }
  0x18   :  { %2296 = vmatmul.mubr.msk.f32.vlgmr.msra.gmra.mrb[0].mxu0 %vm62_vm0, %v49_v16  ;;  %v2556_v16 = vpack.c.bf16 %v367_v13, %v365_v12  ;;  %v371_v19 = vld [vmem:[%s4510_s2 + $0x150] sm:$0xff]  ;;  %v374_v20 = vld [vmem:[%s4510_s2 + $0x168] sm:$0xff]  ;;  %v376_v21 = vld [vmem:[%s4510_s2 + $0x178] sm:$0xff] }
  0x19   :  { %2298 = vmatprep.mubr.msk.f32.mxu0 %vm62_vm0, %v50_v17  ;;  %v2558_v17 = vpack.c.bf16 %v372_v15, %v370_v14  ;;  %v2562_v23 = vpack.c.bf16 %v376_v21, %v374_v20  ;;  %v373_v24 = vld [vmem:[%s4510_s2 + $0x160] sm:$0xff]  ;;  %v375_v25 = vld [vmem:[%s4510_s2 + $0x170] sm:$0xff]  ;;  %v378_v26 = vld [vmem:[%s4510_s2 + $0x188] sm:$0xff] }
  0x1a   :  { %2533 = vmatpush1.bf16.msra.mxu1 %v2532_v44  ;;  %v380_v27 = vld [vmem:[%s4510_s2 + $0x198] sm:$0xff]  ;;  %v2564_v28 = vpack.c.bf16 %v375_v25, %v373_v24  ;;  %v377_v30 = vld [vmem:[%s4510_s2 + $0x180] sm:$0xff]  ;;  %v379_v31 = vld [vmem:[%s4510_s2 + $0x190] sm:$0xff] }
  0x1b   :  { %2535 = vmatprep.subr.bf16.mxu1 %v2534_v45  ;;  %v2566_v29 = vpack.c.bf16 %v380_v27, %v378_v26  ;;  %v2568_v32 = vpack.c.bf16 %v379_v31, %v377_v30  ;;  %v382_v33 = vld [vmem:[%s4510_s2 + $0x1a8] sm:$0xff]  ;;  %v384_v34 = vld [vmem:[%s4510_s2 + $0x1b8] sm:$0xff]  ;;  %v381_v36 = vld [vmem:[%s4510_s2 + $0x1a0] sm:$0xff] }
  0x1c   :  { %2299 = vmatmul.mubr.msk.f32.gmra.mrb[2].mxu0 %vm62_vm0, %v51_v18  ;;  %v369_v18 = vld [vmem:[%s4510_s2 + $0x140] sm:$0xff]  ;;  %v2570_v35 = vpack.c.bf16 %v384_v34, %v382_v33  ;;  %v383_v37 = vld [vmem:[%s4510_s2 + $0x1b0] sm:$0xff]  ;;  %v386_v39 = vld [vmem:[%s4510_s2 + $0x1c8] sm:$0xff]  ;;  %vm288_vm0 = vcmask 523264  }
  0x1d   :  { %v2560_v22 = vpack.c.bf16 %v371_v19, %v369_v18  ;;  %v2572_v38 = vpack.c.bf16 %v383_v37, %v381_v36  ;;  %v388_v40 = vld [vmem:[%s4510_s2 + $0x1d8] sm:$0xff]  ;;  %v385_v42 = vld [vmem:[%s4510_s2 + $0x1c0] sm:$0xff]  ;;  %v387_v43 = vld [vmem:[%s4510_s2 + $0x1d0] sm:$0xff] }
  0x1e   :  { %2537 = vmatpush1.bf16.msra.mxu1 %v2536_v50  ;;  %v2574_v41 = vpack.c.bf16 %v388_v40, %v386_v39  ;;  %v2576_v44 = vpack.c.bf16 %v387_v43, %v385_v42  ;;  %v390_v45 = vld [vmem:[%s4510_s2 + $0x1e8] sm:$0xff]  ;;  %v392_v46 = vld [vmem:[%s4510_s2 + $0x1f8] sm:$0xff]  ;;  %v389_v48 = vld [vmem:[%s4510_s2 + $0x1e0] sm:$0xff] }
  0x1f   :  { %2539 = vmatprep.subr.bf16.mxu1 %v2538_v51  ;;  %v2578_v47 = vpack.c.bf16 %v392_v46, %v390_v45  ;;  %v391_v49 = vld [vmem:[%s4510_s2 + $0x1f0] sm:$0xff]  ;;  %v394_v51 = vld [vmem:[%s4510_s2 + $0x208] sm:$0xff]  ;;  %v396_v52 = vld [vmem:[%s4510_s2 + $0x218] sm:$0xff] }
  0x20   :  { %v2580_v50 = vpack.c.bf16 %v391_v49, %v389_v48  ;;  %v2582_v54 = vpack.c.bf16 %v396_v52, %v394_v51  ;;  %v393_v13 = vld [vmem:[%s4510_s2 + $0x200] sm:$0xff]  ;;  %v395_v14 = vld [vmem:[%s4510_s2 + $0x210] sm:$0xff]  ;;  %v398_v15 = vld [vmem:[%s4510_s2 + $0x228] sm:$0xff] }
  0x21   :  { %v2584_v19 = vpack.c.bf16 %v395_v14, %v393_v13  ;;  %v402_v25 = vld [vmem:[%s4510_s2 + $0x248] sm:$0xff]  ;;  %v404_v26 = vld [vmem:[%s4510_s2 + $0x258] sm:$0xff]  ;;  %v401_v31 = vld [vmem:[%s4510_s2 + $0x240] sm:$0xff] }
  0x22   :  { %2541 = vmatpush1.bf16.msra.mxu1 %v2540_v56  ;;  %v2590_v30 = vpack.c.bf16 %v404_v26, %v402_v25  ;;  %v406_v33 = vld [vmem:[%s4510_s2 + $0x268] sm:$0xff]  ;;  %v408_v34 = vld [vmem:[%s4510_s2 + $0x278] sm:$0xff]  ;;  %v405_v39 = vld [vmem:[%s4510_s2 + $0x260] sm:$0xff] }
  0x23   :  { %2543 = vmatprep.subr.bf16.mxu1 %v2542_v57  ;;  %v407_v40 = vld [vmem:[%s4510_s2 + $0x270] sm:$0xff]  ;;  %v412_v42 = vld [vmem:[%s4510_s2 + $0x298] sm:$0xff]  ;;  %v409_v49 = vld [vmem:[%s4510_s2 + $0x280] sm:$0xff] }
  0x24   :  { %v414_v51 = vld [vmem:[%s4510_s2 + $0x2a8] sm:$0xff]  ;;  %v416_v52 = vld [vmem:[%s4510_s2 + $0x2b8] sm:$0xff]  ;;  %v423_v13 = vld [vmem:[%s4510_s2 + $0x2f0] sm:$0xff] }
  0x25   :  { %v426_v14 = vld [vmem:[%s4510_s2 + $0x308] sm:$0xff] }
  0x26   :  { %2545 = vmatpush1.bf16.msra.mxu1 %v2544_v62 }
  0x27   :  { %2547 = vmatprep.subr.bf16.mxu1 %v2546_v63 }
  0x2a   :  { %2549 = vmatpush1.bf16.msra.mxu1 %v2548_v4 }
  0x2b   :  { %2551 = vmatprep.subr.bf16.mxu1 %v2550_v5 }
  0x2e   :  { %2553 = vmatpush1.bf16.msra.mxu1 %v2552_v10 }
  0x2f   :  { %2555 = vmatprep.subr.bf16.mxu1 %v2554_v11 }
  0x32   :  { %2557 = vmatpush1.bf16.msra.mxu1 %v2556_v16  ;;  %v400_v16 = vld [vmem:[%s4510_s2 + $0x238] sm:$0xff] }
  0x33   :  { %2559 = vmatprep.subr.bf16.mxu1 %v2558_v17  ;;  %v2586_v21 = vpack.c.bf16 %v400_v16, %v398_v15  ;;  %v428_v15 = vld [vmem:[%s4510_s2 + $0x318] sm:$0xff] }
  0x36   :  { %2561 = vmatpush1.bf16.msra.mxu1 %v2560_v22  ;;  %v397_v22 = vld [vmem:[%s4510_s2 + $0x220] sm:$0xff] }
  0x37   :  { %2563 = vmatprep.subr.bf16.mxu1 %v2562_v23  ;;  %v399_v23 = vld [vmem:[%s4510_s2 + $0x230] sm:$0xff] }
  0x3a   :  { %2565 = vmatpush1.bf16.msra.mxu1 %v2564_v28 }
  0x3b   :  { %2567 = vmatprep.subr.bf16.mxu1 %v2566_v29  ;;  %v2588_v29 = vpack.c.bf16 %v399_v23, %v397_v22  ;;  %v430_v22 = vld [vmem:[%s4510_s2 + $0x328] sm:$0xff]  ;;  %v432_v23 = vld [vmem:[%s4510_s2 + $0x338] sm:$0xff] }
  0x3e   :  { %2569 = vmatpush1.bf16.msra.mxu1 %v2568_v32  ;;  %v403_v32 = vld [vmem:[%s4510_s2 + $0x250] sm:$0xff] }
  0x3f   :  { %2571 = vmatprep.subr.bf16.mxu1 %v2570_v35  ;;  %v2592_v37 = vpack.c.bf16 %v403_v32, %v401_v31  ;;  %v436_v31 = vld [vmem:[%s4510_s2 + $0x358] sm:$0xff] }
  0x42   :  { %2573 = vmatpush1.bf16.msra.mxu1 %v2572_v38  ;;  %v2594_v38 = vpack.c.bf16 %v408_v34, %v406_v33 }
  0x43   :  { %2575 = vmatprep.subr.bf16.mxu1 %v2574_v41  ;;  %v410_v41 = vld [vmem:[%s4510_s2 + $0x288] sm:$0xff] }
  0x44   :  { %v2598_v48 = vpack.c.bf16 %v412_v42, %v410_v41  ;;  %v437_v41 = vld [vmem:[%s4510_s2 + $0x360] sm:$0xff]  ;;  %v439_v42 = vld [vmem:[%s4510_s2 + $0x370] sm:$0xff] }
  0x46   :  { %2577 = vmatpush1.bf16.msra.mxu1 %v2576_v44 }
  0x47   :  { %2579 = vmatprep.subr.bf16.mxu1 %v2578_v47  ;;  %v2596_v47 = vpack.c.bf16 %v407_v40, %v405_v39 }
  0x4a   :  { %2581 = vmatpush1.bf16.msra.mxu1 %v2580_v50  ;;  %v411_v50 = vld [vmem:[%s4510_s2 + $0x290] sm:$0xff] }
  0x4b   :  { %2583 = vmatprep.subr.bf16.mxu1 %v2582_v54 }
  0xeb   :  { %v2297_v53 = vpop.f32.mrb[0].mxu0 }
  0xec   :  { %v145_v55 = vpop.f32.mrb[1].mxu0  ;;  %v204_v56 = vrot.slane %v2297_v53, 1  ;;  %v258_v57 = vrot.slane %v2297_v53, 2  ;;  %166 = vst.msk [vmem:[#allocation2 + $0x30] sm:$0xff] %vm164_vm4, %v2297_v53 }
  0xed   :  { %171 = vrot.lane.b32.xlu0 %v145_v55, %s3041_s30  ;;  %v203_v58 = vrot.slane %v145_v55, 1  ;;  %v257_v59 = vrot.slane %v145_v55, 2  ;;  %165 = vst.msk [vmem:[#allocation2] sm:$0xff] %vm164_vm4, %v145_v55 }
  0xef   :  { %v2300_v60 = vpop.f32.mrb[2].mxu0  ;;  %v205_v61 = vsel %vm202_vm5, %v203_v58, %v204_v56  ;;  %v259_v62 = vsel %vm75_vm1, %v257_v59, %v258_v57  ;;  %v2602_v58 = vpack.c.bf16 %v416_v52, %v414_v51  ;;  %v413_v59 = vld [vmem:[%s4510_s2 + $0x2a0] sm:$0xff] }
  0xf0   :  { %v208_v63 = vrot.slane %v2300_v60, 1  ;;  %v262_v0 = vrot.slane %v2300_v60, 2  ;;  %210 = vrot.lane.b32.xlu1 %v205_v61, %s3042_s15  ;;  %v155_v1 = vpop.f32.mrb[3].mxu0  ;;  %v415_v60 = vld [vmem:[%s4510_s2 + $0x2b0] sm:$0xff] }
  0xf1   :  { %188 = vrot.lane.b32.xlu0 %v145_v55, %s3043_s0  ;;  %v206_v2 = vrot.slane %v155_v1, 1  ;;  %v260_v3 = vrot.slane %v155_v1, 2  ;;  %167 = vst.msk [vmem:[#allocation2 + $0x60] sm:$0xff] %vm164_vm4, %v155_v1  ;;  %vm305_vm4 = vcmask 64512  }
  0xf3   :  { %v207_v4 = vsel %vm202_vm5, %v204_v56, %v206_v2  ;;  %v209_v5 = vsel %vm202_vm5, %v206_v2, %v208_v63  ;;  %v261_v6 = vsel %vm75_vm1, %v258_v57, %v260_v3  ;;  %v263_v7 = vsel %vm75_vm1, %v260_v3, %v262_v0 }
  0xf4   :  { %173 = vrot.lane.b32.xlu1 %v2297_v53, %s3041_s30  ;;  %v2600_v57 = vpack.c.bf16 %v411_v50, %v409_v49  ;;  %v2604_v2 = vpack.c.bf16 %v415_v60, %v413_v59  ;;  %v446_v49 = vld [vmem:[%s4510_s2 + $0x3a8] sm:$0xff]  ;;  %v448_v50 = vld [vmem:[%s4510_s2 + $0x3b8] sm:$0xff]  ;;  %v449_v59 = vld [vmem:[%s4510_s2 + $0x3c0] sm:$0xff] }
  0xf5   :  { %190 = vrot.lane.b32.xlu0 %v2297_v53, %s3043_s0  ;;  %v2634_v52 = vpack.c.bf16 %v448_v50, %v446_v49  ;;  %v451_v60 = vld [vmem:[%s4510_s2 + $0x3d0] sm:$0xff]  ;;  %v481_v49 = vld [vmem:[%s4510_s2 + $0x4c0] sm:$0xff] }
  0xf6   :  { %v483_v50 = vld [vmem:[%s4510_s2 + $0x4d0] sm:$0xff] }
  0xf8   :  { %192 = vrot.lane.b32.xlu1 %v155_v1, %s3043_s0 }
  0xf9   :  { %175 = vrot.lane.b32.xlu0 %v155_v1, %s3041_s30  ;;  %s3059_s30 = smov 32  }
  0xfc   :  { %212 = vrot.lane.b32.xlu1 %v207_v4, %s3042_s15 }
  0xfd   :  { %264 = vrot.lane.b32.xlu0 %v259_v62, %s3044_s16 }
 0x100   :  { %240 = vrot.lane.b32.xlu1 %v205_v61, %s3045_s17 }
 0x101   :  { %214 = vrot.lane.b32.xlu0 %v209_v5, %s3042_s15  ;;  %s3060_s15 = smov 84  }
 0x104   :  { %227 = vrot.lane.b32.xlu1 %v205_v61, %s3046_s18  ;;  %v418_v61 = vld [vmem:[%s4510_s2 + $0x2c8] sm:$0xff] }
 0x105   :  { %277 = vrot.lane.b32.xlu0 %v259_v62, %s3047_s19 }
 0x108   :  { %242 = vrot.lane.b32.xlu1 %v207_v4, %s3045_s17 }
 0x109   :  { %266 = vrot.lane.b32.xlu0 %v261_v6, %s3044_s16 }
 0x10c   :  { %229 = vrot.lane.b32.xlu1 %v207_v4, %s3046_s18  ;;  %v417_v4 = vld [vmem:[%s4510_s2 + $0x2c0] sm:$0xff] }
 0x10d   :  { %279 = vrot.lane.b32.xlu0 %v261_v6, %s3047_s19 }
 0x110   :  { %244 = vrot.lane.b32.xlu1 %v209_v5, %s3045_s17 }
 0x111   :  { %268 = vrot.lane.b32.xlu0 %v263_v7, %s3044_s16 }
 0x114   :  { %231 = vrot.lane.b32.xlu1 %v209_v5, %s3046_s18  ;;  %v419_v5 = vld [vmem:[%s4510_s2 + $0x2d0] sm:$0xff] }
 0x115   :  { %281 = vrot.lane.b32.xlu0 %v263_v7, %s3047_s19 }
 0x118   :  { %294 = vrot.lane.b32.xlu1 %v259_v62, %s3048_s20  ;;  %v420_v62 = vld [vmem:[%s4510_s2 + $0x2d8] sm:$0xff] }
 0x119   :  { %296 = vrot.lane.b32.xlu0 %v261_v6, %s3048_s20  ;;  %v2606_v3 = vpack.c.bf16 %v420_v62, %v418_v61  ;;  %v422_v6 = vld [vmem:[%s4510_s2 + $0x2e8] sm:$0xff]  ;;  %v456_v62 = vld [vmem:[%s4510_s2 + $0x3f8] sm:$0xff] }
 0x11a   :  { %v454_v61 = vld [vmem:[%s4510_s2 + $0x3e8] sm:$0xff] }
 0x11c   :  { %298 = vrot.lane.b32.xlu1 %v263_v7, %s3048_s20  ;;  %v424_v7 = vld [vmem:[%s4510_s2 + $0x2f8] sm:$0xff] }
 0x15f   :  { %v172_v8 = vpop.permute.xlu0 %171 }
 0x160   :  { %181 = vst.msk [vmem:[#allocation2] sm:$0xff] %vm180_vm6, %v172_v8 }
 0x161   :  { %183 = vst.msk [vmem:[#allocation2 + $0x8] sm:$0xff] %vm182_vm7, %v172_v8 }
 0x162   :  { %v211_v9 = vpop.permute.xlu1 %210 }
 0x163   :  { %222 = vst.msk [vmem:[#allocation2 + $0x10] sm:$0xff] %vm221_vm8, %v211_v9  ;;  %v189_v10 = vpop.permute.xlu0 %188 }
 0x164   :  { %198 = vst.msk [vmem:[#allocation2 + $0x8] sm:$0xff] %vm197_vm9, %v189_v10  ;;  %v2608_v10 = vpack.c.bf16 %v419_v5, %v417_v4  ;;  %v460_v4 = vld [vmem:[%s4510_s2 + $0x418] sm:$0xff] }
 0x165   :  { %220 = vst.msk [vmem:[#allocation2 + $0x8] sm:$0xff] %vm219_vm10, %v211_v9 }
 0x166   :  { %v174_v11 = vpop.permute.xlu1 %173 }
 0x167   :  { %184 = vst.msk [vmem:[#allocation2 + $0x30] sm:$0xff] %vm180_vm6, %v174_v11  ;;  %v191_v12 = vpop.permute.xlu0 %190  ;;  %v311_v24 = vld [vmem:[#allocation2] sm:$0xff] }
 0x168   :  { %185 = vst.msk [vmem:[#allocation2 + $0x38] sm:$0xff] %vm182_vm7, %v174_v11  ;;  %v2610_v11 = vpack.c.bf16 %v424_v7, %v422_v6  ;;  %v457_v7 = vld [vmem:[%s4510_s2 + $0x400] sm:$0xff] }
 0x169   :  { %199 = vst.msk [vmem:[#allocation2 + $0x38] sm:$0xff] %vm197_vm9, %v191_v12  ;;  %v421_v12 = vld [vmem:[%s4510_s2 + $0x2e0] sm:$0xff] }
 0x16a   :  { %v193_v17 = vpop.permute.xlu1 %192 }
 0x16b   :  { %v176_v18 = vpop.permute.xlu0 %175 }
 0x16c   :  { %186 = vst.msk [vmem:[#allocation2 + $0x60] sm:$0xff] %vm180_vm6, %v176_v18  ;;  %v312_v20 = vld [vmem:[#allocation2 + $0x8] sm:$0xff]  ;;  %vm3051_vm6 = vmmov 0  }
 0x16d   :  { %187 = vst.msk [vmem:[#allocation2 + $0x68] sm:$0xff] %vm182_vm7, %v176_v18  ;;  %576 = vmatprep.mubr.f32.mxu1 %v312_v20  ;;  %v2612_v18 = vpack.c.bf16 %v423_v13, %v421_v12  ;;  %v425_v20 = vld [vmem:[%s4510_s2 + $0x300] sm:$0xff]  ;;  %vm785_vm7 = vcmask 457728  }
 0x16e   :  { %200 = vst.msk [vmem:[#allocation2 + $0x68] sm:$0xff] %vm197_vm9, %v193_v17  ;;  %577 = vmatmul.mubr.f32.vlgmr.msra.gmra.mrb[0].mxu1 %v311_v24  ;;  %v213_v27 = vpop.permute.xlu1 %212  ;;  %v317_v46 = vld [vmem:[#allocation2 + $0x30] sm:$0xff]  ;;  %v461_v13 = vld [vmem:[%s4510_s2 + $0x420] sm:$0xff]  ;;  %vm890_vm9 = vcmask 1043456  }
 0x16f   :  { %2585 = vmatpush1.bf16.msra.mxu1 %v2584_v19  ;;  %223 = vst.msk [vmem:[#allocation2 + $0x38] sm:$0xff] %vm219_vm10, %v213_v27  ;;  %v265_v28 = vpop.permute.xlu0 %264  ;;  %v2614_v19 = vpack.c.bf16 %v428_v15, %v426_v14  ;;  %v463_v14 = vld [vmem:[%s4510_s2 + $0x430] sm:$0xff] }
 0x170   :  { %224 = vst.msk [vmem:[#allocation2 + $0x40] sm:$0xff] %vm221_vm8, %v213_v27  ;;  %2587 = vmatprep.subr.bf16.mxu1 %v2586_v21  ;;  %v427_v21 = vld [vmem:[%s4510_s2 + $0x310] sm:$0xff]  ;;  %v2618_v27 = vpack.c.bf16 %v432_v23, %v430_v22 }
 0x171   :  { %v2616_v26 = vpack.c.bf16 %v427_v21, %v425_v20  ;;  %v465_v21 = vld [vmem:[%s4510_s2 + $0x440] sm:$0xff]  ;;  %v467_v22 = vld [vmem:[%s4510_s2 + $0x450] sm:$0xff] }
 0x172   :  { %v241_v35 = vpop.permute.xlu1 %240 }
 0x173   :  { %2589 = vmatpush1.bf16.msra.mxu1 %v2588_v29  ;;  %252 = vst.msk [vmem:[#allocation2 + $0x18] sm:$0xff] %vm251_vm11, %v241_v35  ;;  %v215_v36 = vpop.permute.xlu0 %214  ;;  %v323_v54 = vld [vmem:[#allocation2 + $0x60] sm:$0xff]  ;;  %v431_v29 = vld [vmem:[%s4510_s2 + $0x330] sm:$0xff] }
 0x174   :  { %225 = vst.msk [vmem:[#allocation2 + $0x68] sm:$0xff] %vm219_vm10, %v215_v36  ;;  %2591 = vmatprep.subr.bf16.mxu1 %v2590_v30  ;;  %v434_v30 = vld [vmem:[%s4510_s2 + $0x348] sm:$0xff]  ;;  %vm900_vm10 = vcmask 484352  }
 0x175   :  { %226 = vst.msk [vmem:[#allocation2 + $0x70] sm:$0xff] %vm221_vm8, %v215_v36  ;;  %v2622_v34 = vpack.c.bf16 %v436_v31, %v434_v30  ;;  %v435_v36 = vld [vmem:[%s4510_s2 + $0x350] sm:$0xff]  ;;  %vm798_vm8 = vcmask 195584  }
 0x176   :  { %274 = vst.msk [vmem:[#allocation2 + $0x18] sm:$0xff] %vm273_vm12, %v265_v28  ;;  %v228_v43 = vpop.permute.xlu1 %227  ;;  %v318_v44 = vld [vmem:[#allocation2 + $0x38] sm:$0xff]  ;;  %v429_v28 = vld [vmem:[%s4510_s2 + $0x320] sm:$0xff]  ;;  %v471_v30 = vld [vmem:[%s4510_s2 + $0x470] sm:$0xff] }
 0x177   :  { %2593 = vmatpush1.bf16.msra.mxu1 %v2592_v37  ;;  %237 = vst.msk [vmem:[#allocation2 + $0x10] sm:$0xff] %vm236_vm13, %v228_v43  ;;  %v278_v45 = vpop.permute.xlu0 %277  ;;  %582 = vmatprep.mubr.f32.mxu1 %v318_v44  ;;  %v2620_v33 = vpack.c.bf16 %v431_v29, %v429_v28  ;;  %v438_v37 = vld [vmem:[%s4510_s2 + $0x368] sm:$0xff]  ;;  %v444_v44 = vld [vmem:[%s4510_s2 + $0x398] sm:$0xff]  ;;  %v469_v29 = vld [vmem:[%s4510_s2 + $0x460] sm:$0xff] }
 0x178   :  { %250 = vst.msk [vmem:[#allocation2 + $0x10] sm:$0xff] %vm249_vm14, %v241_v35  ;;  %583 = vmatmul.mubr.f32.gmra.mrb[2].mxu1 %v317_v46  ;;  %2595 = vmatprep.subr.bf16.mxu1 %v2594_v38  ;;  %v433_v35 = vld [vmem:[%s4510_s2 + $0x340] sm:$0xff]  ;;  %v440_v38 = vld [vmem:[%s4510_s2 + $0x378] sm:$0xff]  ;;  %v442_v43 = vld [vmem:[%s4510_s2 + $0x388] sm:$0xff] }
 0x179   :  { %287 = vst.msk [vmem:[#allocation2 + $0x18] sm:$0xff] %vm286_vm15, %v278_v45  ;;  %v2624_v39 = vpack.c.bf16 %v435_v36, %v433_v35  ;;  %v2626_v40 = vpack.c.bf16 %v440_v38, %v438_v37  ;;  %v2630_v46 = vpack.c.bf16 %v444_v44, %v442_v43  ;;  %v2660_v35 = vpack.c.bf16 %v471_v30, %v469_v29  ;;  %v473_v37 = vld [vmem:[%s4510_s2 + $0x480] sm:$0xff]  ;;  %v475_v38 = vld [vmem:[%s4510_s2 + $0x490] sm:$0xff] }
 0x17a   :  { %289 = vst.msk [vmem:[#allocation2 + $0x20] sm:$0xff] %vm288_vm0, %v278_v45  ;;  %v243_v53 = vpop.permute.xlu1 %242  ;;  %v2628_v45 = vpack.c.bf16 %v439_v42, %v437_v41  ;;  %v2664_v41 = vpack.c.bf16 %v475_v38, %v473_v37  ;;  %v477_v43 = vld [vmem:[%s4510_s2 + $0x4a0] sm:$0xff]  ;;  %v479_v44 = vld [vmem:[%s4510_s2 + $0x4b0] sm:$0xff] }
 0x17b   :  { %2597 = vmatpush1.bf16.msra.mxu1 %v2596_v47  ;;  %254 = vst.msk [vmem:[#allocation2 + $0x48] sm:$0xff] %vm251_vm11, %v243_v53  ;;  %v267_v55 = vpop.permute.xlu0 %266  ;;  %v324_v56 = vld [vmem:[#allocation2 + $0x68] sm:$0xff]  ;;  %v441_v47 = vld [vmem:[%s4510_s2 + $0x380] sm:$0xff] }
 0x17c   :  { %275 = vst.msk [vmem:[#allocation2 + $0x48] sm:$0xff] %vm273_vm12, %v267_v55  ;;  %2599 = vmatprep.subr.bf16.mxu1 %v2598_v48  ;;  %588 = vmatprep.mubr.f32.mxu1 %v324_v56  ;;  %v443_v48 = vld [vmem:[%s4510_s2 + $0x390] sm:$0xff]  ;;  %v450_v55 = vld [vmem:[%s4510_s2 + $0x3c8] sm:$0xff]  ;;  %v452_v56 = vld [vmem:[%s4510_s2 + $0x3d8] sm:$0xff] }
 0x17d   :  { %589 = vmatmul.mubr.f32.gmra.mrb[4].mxu1 %v323_v54  ;;  %v2632_v51 = vpack.c.bf16 %v443_v48, %v441_v47  ;;  %v447_v54 = vld [vmem:[%s4510_s2 + $0x3b0] sm:$0xff]  ;;  %v2668_v47 = vpack.c.bf16 %v479_v44, %v477_v43 }
 0x17e   :  { %v230_v63 = vpop.permute.xlu1 %229 }
 0x17f   :  { %2601 = vmatpush1.bf16.msra.mxu1 %v2600_v57  ;;  %238 = vst.msk [vmem:[#allocation2 + $0x40] sm:$0xff] %vm236_vm13, %v230_v63  ;;  %v280_v0 = vpop.permute.xlu0 %279  ;;  %v2640_v63 = vpack.c.bf16 %v451_v60, %v449_v59  ;;  %v313_v15 = vld [vmem:[#allocation2 + $0x10] sm:$0xff]  ;;  %v489_v59 = vld [vmem:[%s4510_s2 + $0x500] sm:$0xff] }
 0x180   :  { %v314_v1 = vld [vmem:[#allocation2 + $0x18] sm:$0xff]  ;;  %253 = vst.msk [vmem:[#allocation2 + $0x40] sm:$0xff] %vm249_vm14, %v243_v53  ;;  %2603 = vmatprep.subr.bf16.mxu1 %v2602_v58  ;;  %v445_v53 = vld [vmem:[%s4510_s2 + $0x3a0] sm:$0xff]  ;;  %v2638_v58 = vpack.c.bf16 %v452_v56, %v450_v55  ;;  %v487_v56 = vld [vmem:[%s4510_s2 + $0x4f0] sm:$0xff] }
 0x181   :  { %290 = vst.msk [vmem:[#allocation2 + $0x48] sm:$0xff] %vm286_vm15, %v280_v0  ;;  %659 = vmatprep.mubr.f32.mxu1 %v314_v1  ;;  %v2636_v57 = vpack.c.bf16 %v447_v54, %v445_v53  ;;  %v453_v1 = vld [vmem:[%s4510_s2 + $0x3e0] sm:$0xff]  ;;  %v2672_v53 = vpack.c.bf16 %v483_v50, %v481_v49  ;;  %v1017_v49 = vld [vmem:[%s4513_s5 + $0x18] sm:$0xff] }
 0x182   :  { %291 = vst.msk [vmem:[#allocation2 + $0x50] sm:$0xff] %vm288_vm0, %v280_v0  ;;  %v245_v8 = vpop.permute.xlu1 %244  ;;  %v2642_v0 = vpack.c.bf16 %v456_v62, %v454_v61  ;;  %v485_v55 = vld [vmem:[%s4510_s2 + $0x4e0] sm:$0xff] }
 0x183   :  { %2605 = vmatpush1.bf16.msra.mxu1 %v2604_v2  ;;  %256 = vst.msk [vmem:[#allocation2 + $0x78] sm:$0xff] %vm251_vm11, %v245_v8  ;;  %v269_v9 = vpop.permute.xlu0 %268  ;;  %v455_v2 = vld [vmem:[%s4510_s2 + $0x3f0] sm:$0xff]  ;;  %v1014_v50 = vld [vmem:[%s4513_s5] sm:$0xff] }
 0x184   :  { %276 = vst.msk [vmem:[#allocation2 + $0x78] sm:$0xff] %vm273_vm12, %v269_v9  ;;  %2607 = vmatprep.subr.bf16.mxu1 %v2606_v3  ;;  %v458_v3 = vld [vmem:[%s4510_s2 + $0x408] sm:$0xff]  ;;  %v2644_v5 = vpack.c.bf16 %v455_v2, %v453_v1  ;;  %v493_v1 = vlaneseq  ;;  %vm898_vm12 = vcmask 490496  }
 0x185   :  { %v2646_v6 = vpack.c.bf16 %v460_v4, %v458_v3  ;;  %v462_v9 = vld [vmem:[%s4510_s2 + $0x428] sm:$0xff]  ;;  %v491_v4 = vld [vmem:[%s4511_s3] sm:$0x3]  ;;  %s3050_s3 = smov 56  }
 0x186   :  { %v232_v16 = vpop.permute.xlu1 %231  ;;  %v3725_v2 = vshrl.u32 %v493_v1, 7  ;;  %v1027_v1 = vld [vmem:[%s4513_s5 + $0x68] sm:$0xff] }
 0x187   :  { %2609 = vmatpush1.bf16.msra.mxu1 %v2608_v10  ;;  %239 = vst.msk [vmem:[#allocation2 + $0x70] sm:$0xff] %vm236_vm13, %v232_v16  ;;  %v282_v17 = vpop.permute.xlu0 %281  ;;  %v464_v10 = vld [vmem:[%s4510_s2 + $0x438] sm:$0xff]  ;;  %v466_v16 = vld [vmem:[%s4510_s2 + $0x448] sm:$0xff]  ;;  %v319_v23 = vld [vmem:[#allocation2 + $0x40] sm:$0xff]  ;;  %vm910_vm13 = vcmask 982496  }
 0x188   :  { %255 = vst.msk [vmem:[#allocation2 + $0x70] sm:$0xff] %vm249_vm14, %v245_v8  ;;  %2611 = vmatprep.subr.bf16.mxu1 %v2610_v11  ;;  %v459_v8 = vld [vmem:[%s4510_s2 + $0x410] sm:$0xff]  ;;  %v2650_v12 = vpack.c.bf16 %v464_v10, %v462_v9  ;;  %v495_v3 = vsub.s32 0, %v3725_v2 }
 0x189   :  { %292 = vst.msk [vmem:[#allocation2 + $0x78] sm:$0xff] %vm286_vm15, %v282_v17  ;;  %v2648_v11 = vpack.c.bf16 %v459_v8, %v457_v7 }
 0x18a   :  { %293 = vst.msk [vmem:[#allocation2 + $0x80] sm:$0xff] %vm288_vm0, %v282_v17  ;;  %v295_v24 = vpop.permute.xlu1 %294  ;;  %v468_v17 = vld [vmem:[%s4510_s2 + $0x458] sm:$0xff]  ;;  %vm946_vm0 = vcmask 1048448  }
 0x18b   :  { %2613 = vmatpush1.bf16.msra.mxu1 %v2612_v18  ;;  %304 = vst.msk [vmem:[#allocation2 + $0x20] sm:$0xff] %vm303_vm3, %v295_v24  ;;  %v297_v25 = vpop.permute.xlu0 %296  ;;  %v320_v18 = vld [vmem:[#allocation2 + $0x48] sm:$0xff]  ;;  %v2654_v20 = vpack.c.bf16 %v468_v17, %v466_v16  ;;  %v3049_v17 = vmov 0.0|0.0  }
 0x18c   :  { %306 = vst.msk [vmem:[#allocation2 + $0x28] sm:$0xff] %vm305_vm4, %v295_v24  ;;  %308 = vst.msk [vmem:[#allocation2 + $0x58] sm:$0xff] %vm305_vm4, %v297_v25  ;;  %2615 = vmatprep.subr.bf16.mxu1 %v2614_v19  ;;  %v2652_v19 = vpack.c.bf16 %v463_v14, %v461_v13  ;;  %v470_v24 = vld [vmem:[%s4510_s2 + $0x468] sm:$0xff]  ;;  %2678 = vmatprep.subr.bf16.mxu0 %v3049_v17 }
 0x18d   :  { %307 = vst.msk [vmem:[#allocation2 + $0x50] sm:$0xff] %vm303_vm3, %v297_v25  ;;  %v472_v25 = vld [vmem:[%s4510_s2 + $0x478] sm:$0xff] }
 0x18e   :  { %v299_v32 = vpop.permute.xlu1 %298  ;;  %v2658_v28 = vpack.c.bf16 %v472_v25, %v470_v24 }
 0x18f   :  { %2617 = vmatpush1.bf16.msra.mxu1 %v2616_v26  ;;  %309 = vst.msk [vmem:[#allocation2 + $0x80] sm:$0xff] %vm303_vm3, %v299_v32  ;;  %v325_v31 = vld [vmem:[#allocation2 + $0x70] sm:$0xff]  ;;  %vm948_vm3 = vcmask 359424  }
 0x190   :  { %310 = vst.msk [vmem:[#allocation2 + $0x88] sm:$0xff] %vm305_vm4, %v299_v32  ;;  %2619 = vmatprep.subr.bf16.mxu1 %v2618_v27  ;;  %v326_v26 = vld [vmem:[#allocation2 + $0x78] sm:$0xff]  ;;  %v2656_v27 = vpack.c.bf16 %v467_v22, %v465_v21  ;;  %v474_v32 = vld [vmem:[%s4510_s2 + $0x488] sm:$0xff] }
 0x192   :  { %v315_v60 = vld [vmem:[#allocation2 + $0x20] sm:$0xff] }
 0x193   :  { %2621 = vmatpush1.bf16.msra.mxu1 %v2620_v33  ;;  %v476_v33 = vld [vmem:[%s4510_s2 + $0x498] sm:$0xff] }
 0x194   :  { %2623 = vmatprep.subr.bf16.mxu1 %v2622_v34  ;;  %v316_v34 = vld [vmem:[#allocation2 + $0x28] sm:$0xff]  ;;  %v2662_v36 = vpack.c.bf16 %v476_v33, %v474_v32  ;;  %v322_v61 = vld [vmem:[#allocation2 + $0x58] sm:$0xff]  ;;  %v321_v62 = vld [vmem:[#allocation2 + $0x50] sm:$0xff] }
 0x197   :  { %2625 = vmatpush1.bf16.msra.mxu1 %v2624_v39  ;;  %v478_v39 = vld [vmem:[%s4510_s2 + $0x4a8] sm:$0xff] }
 0x198   :  { %2627 = vmatprep.subr.bf16.mxu1 %v2626_v40  ;;  %v480_v40 = vld [vmem:[%s4510_s2 + $0x4b8] sm:$0xff] }
 0x199   :  { %v2666_v42 = vpack.c.bf16 %v480_v40, %v478_v39 }
 0x19b   :  { %2629 = vmatpush1.bf16.msra.mxu1 %v2628_v45  ;;  %v482_v45 = vld [vmem:[%s4510_s2 + $0x4c8] sm:$0xff] }
 0x19c   :  { %2631 = vmatprep.subr.bf16.mxu1 %v2630_v46  ;;  %v484_v46 = vld [vmem:[%s4510_s2 + $0x4d8] sm:$0xff] }
 0x19d   :  { %v2670_v48 = vpack.c.bf16 %v484_v46, %v482_v45  ;;  %v795_v45 = vld [vmem:[%s4512_s4] sm:$0xff]  ;;  %v796_v46 = vld [vmem:[%s4512_s4 + $0x8] sm:$0xff] }
 0x19f   :  { %2633 = vmatpush1.bf16.msra.mxu1 %v2632_v51  ;;  %v486_v51 = vld [vmem:[%s4510_s2 + $0x4e8] sm:$0xff] }
 0x1a0   :  { %2635 = vmatprep.subr.bf16.mxu1 %v2634_v52  ;;  %v488_v52 = vld [vmem:[%s4510_s2 + $0x4f8] sm:$0xff] }
 0x1a1   :  { %v2674_v54 = vpack.c.bf16 %v488_v52, %v486_v51  ;;  %v1016_v52 = vld [vmem:[%s4513_s5 + $0x10] sm:$0xff] }
 0x1a3   :  { %2637 = vmatpush1.bf16.msra.mxu1 %v2636_v57  ;;  %v2676_v57 = vpack.c.bf16 %v487_v56, %v485_v55  ;;  %v2683_v55 = vpack.c.bf16 %v1016_v52, %v1014_v50  ;;  %v1054_v52 = vld [vmem:[%s4513_s5 + $0x140] sm:$0xff] }
 0x1a4   :  { %2639 = vmatprep.subr.bf16.mxu1 %v2638_v58  ;;  %v490_v58 = vld [vmem:[%s4510_s2 + $0x508] sm:$0xff]  ;;  %s3053_s2 = smov 108  }
 0x1a7   :  { %2641 = vmatpush1.bf16.msra.mxu1 %v2640_v63  ;;  %v328_v63 = vld [vmem:[#allocation2 + $0x88] sm:$0xff] }
 0x1a8   :  { %2643 = vmatprep.subr.bf16.mxu1 %v2642_v0  ;;  %v327_v0 = vld [vmem:[#allocation2 + $0x80] sm:$0xff] }
 0x1ab   :  { %2645 = vmatpush1.bf16.msra.mxu1 %v2644_v5  ;;  %v499_v5 = vsub.s32 1, %v3725_v2 }
 0x1ac   :  { %2647 = vmatprep.subr.bf16.mxu1 %v2646_v6  ;;  %v496_v6 = vrot.slane %v491_v4, %v495_v3 }
 0x1ad   :  { %v500_v7 = vrot.slane %v491_v4, %v499_v5  ;;  %v1029_v4 = vld [vmem:[%s4513_s5 + $0x78] sm:$0xff] }
 0x1ae   :  { %660 = vmatmul.mubr.f32.vlgmr.msra.gmra.mrb[0].mxu1 %v313_v15 }
 0x1af   :  { %665 = vmatprep.mubr.f32.mxu1 %v320_v18  ;;  %2649 = vmatpush1.bf16.msra.mxu1 %v2648_v11 }
 0x1b0   :  { %2651 = vmatprep.subr.bf16.mxu1 %v2650_v12 }
 0x1b2   :  { %666 = vmatmul.mubr.f32.gmra.mrb[2].mxu1 %v319_v23 }
 0x1b3   :  { %671 = vmatprep.mubr.f32.mxu1 %v326_v26  ;;  %2653 = vmatpush1.bf16.msra.mxu1 %v2652_v19 }
 0x1b4   :  { %2655 = vmatprep.subr.bf16.mxu1 %v2654_v20 }
 0x1b6   :  { %672 = vmatmul.mubr.f32.gmra.mrb[4].mxu1 %v325_v31 }
 0x1b7   :  { %2657 = vmatpush1.bf16.msra.mxu1 %v2656_v27  ;;  %2147 = vmatprep.mubr.msk.f32.mxu1 %vm305_vm4, %v316_v34  ;;  %v3052_v27 = vmov 0.0  }
 0x1b8   :  { %2659 = vmatprep.subr.bf16.mxu1 %v2658_v28  ;;  %2307 = vmatprep.mubr.msk.f32.mxu0 %vm3051_vm6, %v3052_v27 }
 0x1bb   :  { %2661 = vmatpush1.bf16.msra.mxu1 %v2660_v35 }
 0x1bc   :  { %2663 = vmatprep.subr.bf16.mxu1 %v2662_v36 }
 0x1bf   :  { %2665 = vmatpush1.bf16.msra.mxu1 %v2664_v41 }
 0x1c0   :  { %2667 = vmatprep.subr.bf16.mxu1 %v2666_v42 }
 0x1c3   :  { %2669 = vmatpush1.bf16.msra.mxu1 %v2668_v47  ;;  %v797_v47 = vld [vmem:[%s4512_s4 + $0x10] sm:$0xff] }
 0x1c4   :  { %2671 = vmatprep.subr.bf16.mxu1 %v2670_v48  ;;  %v1015_v48 = vld [vmem:[%s4513_s5 + $0x8] sm:$0xff] }
 0x1c5   :  { %v2681_v51 = vpack.c.bf16 %v1017_v49, %v1015_v48  ;;  %v1055_v48 = vld [vmem:[%s4513_s5 + $0x148] sm:$0xff]  ;;  %v1057_v49 = vld [vmem:[%s4513_s5 + $0x158] sm:$0xff] }
 0x1c7   :  { %2673 = vmatpush1.bf16.msra.mxu1 %v2672_v53  ;;  %v1019_v53 = vld [vmem:[%s4513_s5 + $0x28] sm:$0xff] }
 0x1c8   :  { %2675 = vmatprep.subr.bf16.mxu1 %v2674_v54  ;;  %v1021_v54 = vld [vmem:[%s4513_s5 + $0x38] sm:$0xff] }
 0x1c9   :  { %v2685_v56 = vpack.c.bf16 %v1021_v54, %v1019_v53  ;;  %v1056_v53 = vld [vmem:[%s4513_s5 + $0x150] sm:$0xff]  ;;  %v1059_v54 = vld [vmem:[%s4513_s5 + $0x168] sm:$0xff] }
 0x1cb   :  { %2677 = vmatpush1.bf16.msra.mxu1 %v2676_v57  ;;  %v1018_v57 = vld [vmem:[%s4513_s5 + $0x20] sm:$0xff] }
 0x1cc   :  { %710 = vmatprep.subr.mxu1 %v490_v58  ;;  %v1020_v58 = vld [vmem:[%s4513_s5 + $0x30] sm:$0xff] }
 0x1cf   :  { %711 = vmatpush1.msra.mxu1 %v489_v59  ;;  %v1023_v59 = vld [vmem:[%s4513_s5 + $0x48] sm:$0xff] }
 0x1d0   :  { %743 = vmatmul.mubr.f32.vlgmr.msra.gmra.mrb[0].mxu1 %v315_v60  ;;  %2840 = vmatprep.subr.bf16.mxu1 %v3049_v17  ;;  %v1025_v60 = vld [vmem:[%s4513_s5 + $0x58] sm:$0xff] }
 0x1d1   :  { %2148 = vmatprep.mubr.msk.f32.mxu1 %vm305_vm4, %v322_v61  ;;  %v2687_v61 = vpack.c.bf16 %v1020_v58, %v1018_v57  ;;  %v1058_v58 = vld [vmem:[%s4513_s5 + $0x160] sm:$0xff] }
 0x1d4   :  { %749 = vmatmul.mubr.f32.gmra.mrb[2].mxu1 %v321_v62  ;;  %v2689_v62 = vpack.c.bf16 %v1025_v60, %v1023_v59  ;;  %v1060_v59 = vld [vmem:[%s4513_s5 + $0x170] sm:$0xff]  ;;  %v1063_v60 = vld [vmem:[%s4513_s5 + $0x188] sm:$0xff] }
 0x1d5   :  { %2149 = vmatprep.mubr.msk.f32.mxu1 %vm305_vm4, %v328_v63  ;;  %v1022_v63 = vld [vmem:[%s4513_s5 + $0x40] sm:$0xff]  ;;  %vm925_vm4 = vcmask 418816  }
 0x1d8   :  { %755 = vmatmul.mubr.f32.gmra.mrb[4].mxu1 %v327_v0  ;;  %v1024_v0 = vld [vmem:[%s4513_s5 + $0x50] sm:$0xff] }
 0x1d9   :  { %2366 = vmatprep.mubr.msk.f32.mxu1 %vm3051_vm6, %v3052_v27 }
 0x2a3   :  { %v744_v8 = vpop.f32.mrb[0].mxu1 }
 0x2a4   :  { %v2936_v9 = vadd.f32 %v744_v8, %v496_v6  ;;  %v746_v10 = vpop.f32.mrb[1].mxu1  ;;  %v1026_v8 = vld [vmem:[%s4513_s5 + $0x60] sm:$0xff] }
 0x2a5   :  { %v2937_v11 = vadd.f32 %v746_v10, %v500_v7  ;;  %v1031_v10 = vld [vmem:[%s4513_s5 + $0x88] sm:$0xff] }
 0x2a6   :  { %v761_v12 = vmax.f32 %v2936_v9, 0.0  ;;  %v1028_v9 = vld [vmem:[%s4513_s5 + $0x70] sm:$0xff] }
 0x2a7   :  { %v762_v13 = vmax.f32 %v2937_v11, 0.0  ;;  %v750_v14 = vpop.f32.mrb[2].mxu1  ;;  %v1033_v11 = vld [vmem:[%s4513_s5 + $0x98] sm:$0xff] }
 0x2a8   :  { %v2938_v15 = vadd.f32 %v750_v14, %v496_v6  ;;  %v752_v16 = vpop.f32.mrb[3].mxu1  ;;  %v1030_v14 = vld [vmem:[%s4513_s5 + $0x80] sm:$0xff] }
 0x2a9   :  { %v2996_v18 = vpack.i.bf16 %v762_v13, %v761_v12  ;;  %v2939_v19 = vadd.f32 %v752_v16, %v500_v7  ;;  %v2697_v13 = vpack.c.bf16 %v1033_v11, %v1031_v10  ;;  %v1035_v16 = vld [vmem:[%s4513_s5 + $0xa8] sm:$0xff]  ;;  %v1066_v11 = vld [vmem:[%s4513_s5 + $0x1a0] sm:$0xff] }
 0x2aa   :  { %v763_v20 = vmax.f32 %v2938_v15, 0.0  ;;  %v1032_v15 = vld [vmem:[%s4513_s5 + $0x90] sm:$0xff] }
 0x2ab   :  { %v764_v21 = vmax.f32 %v2939_v19, 0.0  ;;  %v756_v22 = vpop.f32.mrb[4].mxu1  ;;  %2997 = vrot.lane.b32.xlu0 %v2996_v18, %s3050_s3  ;;  %v1037_v18 = vld [vmem:[%s4513_s5 + $0xb8] sm:$0xff]  ;;  %v2699_v19 = vpack.c.bf16 %v1032_v15, %v1030_v14 }
 0x2ac   :  { %v2940_v23 = vadd.f32 %v756_v22, %v496_v6  ;;  %v758_v24 = vpop.f32.mrb[5].mxu1  ;;  %v2691_v6 = vpack.c.bf16 %v1024_v0, %v1022_v63  ;;  %v1036_v22 = vld [vmem:[%s4513_s5 + $0xb0] sm:$0xff]  ;;  %v1062_v0 = vld [vmem:[%s4513_s5 + $0x180] sm:$0xff] }
 0x2ad   :  { %v3001_v25 = vpack.i.bf16 %v764_v21, %v763_v20  ;;  %v2941_v26 = vadd.f32 %v758_v24, %v500_v7  ;;  %v2693_v7 = vpack.c.bf16 %v1029_v4, %v1027_v1  ;;  %v1034_v21 = vld [vmem:[%s4513_s5 + $0xa0] sm:$0xff]  ;;  %v1041_v24 = vld [vmem:[%s4513_s5 + $0xd8] sm:$0xff]  ;;  %v1064_v1 = vld [vmem:[%s4513_s5 + $0x190] sm:$0xff] }
 0x2ae   :  { %v765_v28 = vmax.f32 %v2940_v23, 0.0  ;;  %v1039_v23 = vld [vmem:[%s4513_s5 + $0xc8] sm:$0xff]  ;;  %v2731_v4 = vpack.c.bf16 %v1064_v1, %v1062_v0 }
 0x2af   :  { %3002 = vrot.lane.b32.xlu1 %v3001_v25, %s3050_s3  ;;  %v766_v29 = vmax.f32 %v2941_v26, 0.0  ;;  %v2703_v25 = vpack.c.bf16 %v1036_v22, %v1034_v21  ;;  %v2705_v26 = vpack.c.bf16 %v1041_v24, %v1039_v23  ;;  %v1072_v21 = vld [vmem:[%s4513_s5 + $0x1d0] sm:$0xff]  ;;  %v1087_v1 = vld [vmem:[%s4513_s5 + $0x248] sm:$0xff] }
 0x2b0   :  { %781 = vrot.lane.b32.xlu0 %v765_v28, %s3050_s3 }
 0x2b3   :  { %783 = vrot.lane.b32.xlu1 %v766_v29, %s3050_s3  ;;  %v1040_v29 = vld [vmem:[%s4513_s5 + $0xd0] sm:$0xff]  ;;  %s3054_s3 = smov 52  }
 0x31d   :  { %v2998_v30 = vpop.permute.xlu0 %2997 }
 0x31e   :  { %v3000_v31 = vunpack.i.h.bf16 %v2998_v30  ;;  %v2999_v32 = vunpack.i.l.bf16 %v2998_v30  ;;  %v1043_v30 = vld [vmem:[%s4513_s5 + $0xe8] sm:$0xff] }
 0x320   :  { %v786_v36 = vsel %vm785_vm7, %v2999_v32, %v3000_v31  ;;  %v1045_v31 = vld [vmem:[%s4513_s5 + $0xf8] sm:$0xff] }
 0x321   :  { %v3003_v33 = vpop.permute.xlu1 %3002  ;;  %v792_v39 = vmax.f32 %v761_v12, %v786_v36  ;;  %v2695_v12 = vpack.c.bf16 %v1028_v9, %v1026_v8  ;;  %v1047_v36 = vld [vmem:[%s4513_s5 + $0x108] sm:$0xff]  ;;  %v1069_v9 = vld [vmem:[%s4513_s5 + $0x1b8] sm:$0xff] }
 0x322   :  { %v3005_v34 = vunpack.i.h.bf16 %v3003_v33  ;;  %v3004_v35 = vunpack.i.l.bf16 %v3003_v33  ;;  %v782_v41 = vpop.permute.xlu0 %781  ;;  %v2709_v33 = vpack.c.bf16 %v1045_v31, %v1043_v30  ;;  %v1067_v8 = vld [vmem:[%s4513_s5 + $0x1a8] sm:$0xff]  ;;  %v1074_v31 = vld [vmem:[%s4513_s5 + $0x1e0] sm:$0xff] }
 0x323   :  { %v2733_v10 = vpack.c.bf16 %v1069_v9, %v1067_v8  ;;  %v1086_v9 = vld [vmem:[%s4513_s5 + $0x240] sm:$0xff] }
 0x324   :  { %v787_v37 = vsel %vm785_vm7, %v3004_v35, %v3005_v34  ;;  %v1042_v34 = vld [vmem:[%s4513_s5 + $0xe0] sm:$0xff]  ;;  %v1044_v35 = vld [vmem:[%s4513_s5 + $0xf0] sm:$0xff] }
 0x325   :  { %v784_v38 = vpop.permute.xlu1 %783  ;;  %v793_v40 = vmax.f32 %v763_v20, %v787_v37  ;;  %v2701_v20 = vpack.c.bf16 %v1037_v18, %v1035_v16  ;;  %v1049_v37 = vld [vmem:[%s4513_s5 + $0x118] sm:$0xff]  ;;  %v1071_v16 = vld [vmem:[%s4513_s5 + $0x1c8] sm:$0xff] }
 0x326   :  { %v788_v43 = vsel %vm785_vm7, %v782_v41, %v784_v38  ;;  %v2711_v38 = vpack.c.bf16 %v1044_v35, %v1042_v34  ;;  %v1048_v41 = vld [vmem:[%s4513_s5 + $0x110] sm:$0xff]  ;;  %v1073_v18 = vld [vmem:[%s4513_s5 + $0x1d8] sm:$0xff]  ;;  %vm938_vm7 = vcmask 910752  }
 0x327   :  { %v2679_v42 = vpack.c.bf16 %v793_v40, %v792_v39  ;;  %v794_v44 = vmax.f32 %v765_v28, %v788_v43  ;;  %v1038_v28 = vld [vmem:[%s4513_s5 + $0xc0] sm:$0xff]  ;;  %v2713_v39 = vpack.c.bf16 %v1049_v37, %v1047_v36  ;;  %v1053_v43 = vld [vmem:[%s4513_s5 + $0x138] sm:$0xff] }
 0x328   :  { %v2707_v32 = vpack.c.bf16 %v1040_v29, %v1038_v28  ;;  %v1046_v40 = vld [vmem:[%s4513_s5 + $0x100] sm:$0xff]  ;;  %v1075_v28 = vld [vmem:[%s4513_s5 + $0x1e8] sm:$0xff]  ;;  %v1077_v29 = vld [vmem:[%s4513_s5 + $0x1f8] sm:$0xff] }
 0x329   :  { %2680 = vmatpush3.bf16.msra.mxu0 %v2679_v42  ;;  %v1051_v42 = vld [vmem:[%s4513_s5 + $0x128] sm:$0xff]  ;;  %v2741_v30 = vpack.c.bf16 %v1077_v29, %v1075_v28  ;;  %v1094_v29 = vld [vmem:[%s4513_s5 + $0x280] sm:$0xff] }
 0x32a   :  { %2305 = vmatprep.subr.mxu0 %v3052_v27 }
 0x32d   :  { %2306 = vmatpush3.msra.mxu0 %v794_v44  ;;  %v2715_v44 = vpack.c.bf16 %v1048_v41, %v1046_v40  ;;  %v1081_v40 = vld [vmem:[%s4513_s5 + $0x218] sm:$0xff] }
 0x32e   :  { %2308 = vmatmul.mubr.msk.f32.vlgmr.msra.gmra.mrb[4].mxu0 %vm798_vm8, %v795_v45  ;;  %2682 = vmatprep.subr.bf16.mxu0 %v2681_v51  ;;  %v2717_v45 = vpack.c.bf16 %v1053_v43, %v1051_v42  ;;  %v2721_v51 = vpack.c.bf16 %v1057_v49, %v1055_v48 }
 0x32f   :  { %2310 = vmatprep.mubr.msk.f32.mxu0 %vm3051_vm6, %v3052_v27  ;;  %2684 = vmatpush1.bf16.msra.mxu0 %v2683_v55  ;;  %v1061_v55 = vld [vmem:[%s4513_s5 + $0x178] sm:$0xff] }
 0x330   :  { %2686 = vmatprep.subr.bf16.mxu0 %v2685_v56  ;;  %v2723_v56 = vpack.c.bf16 %v1056_v53, %v1054_v52  ;;  %v2725_v57 = vpack.c.bf16 %v1061_v55, %v1059_v54  ;;  %v1078_v52 = vld [vmem:[%s4513_s5 + $0x200] sm:$0xff]  ;;  %v1080_v53 = vld [vmem:[%s4513_s5 + $0x210] sm:$0xff]  ;;  %v1083_v55 = vld [vmem:[%s4513_s5 + $0x228] sm:$0xff] }
 0x332   :  { %2311 = vmatmul.mubr.msk.f32.gmra.mrb[6].mxu0 %vm798_vm8, %v796_v46  ;;  %v1050_v46 = vld [vmem:[%s4513_s5 + $0x120] sm:$0xff] }
 0x333   :  { %2313 = vmatprep.mubr.msk.f32.mxu0 %vm3051_vm6, %v3052_v27  ;;  %2688 = vmatpush1.bf16.msra.mxu0 %v2687_v61  ;;  %v1065_v61 = vld [vmem:[%s4513_s5 + $0x198] sm:$0xff] }
 0x334   :  { %2690 = vmatprep.subr.bf16.mxu0 %v2689_v62  ;;  %v2727_v62 = vpack.c.bf16 %v1060_v59, %v1058_v58  ;;  %v2729_v63 = vpack.c.bf16 %v1065_v61, %v1063_v60  ;;  %v1082_v61 = vld [vmem:[%s4513_s5 + $0x220] sm:$0xff] }
 0x336   :  { %2314 = vmatmul.mubr.msk.f32.gmra.mrb[8].mxu0 %vm798_vm8, %v797_v47  ;;  %v1052_v47 = vld [vmem:[%s4513_s5 + $0x130] sm:$0xff]  ;;  %vm912_vm8 = vcmask 976352  }
 0x337   :  { %2692 = vmatpush1.bf16.msra.mxu0 %v2691_v6  ;;  %v2719_v50 = vpack.c.bf16 %v1052_v47, %v1050_v46 }
 0x338   :  { %2694 = vmatprep.subr.bf16.mxu0 %v2693_v7 }
 0x33b   :  { %2696 = vmatpush1.bf16.msra.mxu0 %v2695_v12  ;;  %v1068_v12 = vld [vmem:[%s4513_s5 + $0x1b0] sm:$0xff] }
 0x33c   :  { %2698 = vmatprep.subr.bf16.mxu0 %v2697_v13  ;;  %v2735_v13 = vpack.c.bf16 %v1068_v12, %v1066_v11  ;;  %v1091_v12 = vld [vmem:[%s4513_s5 + $0x268] sm:$0xff] }
 0x33f   :  { %2700 = vmatpush1.bf16.msra.mxu0 %v2699_v19  ;;  %v2737_v19 = vpack.c.bf16 %v1073_v18, %v1071_v16 }
 0x340   :  { %2702 = vmatprep.subr.bf16.mxu0 %v2701_v20  ;;  %v1070_v20 = vld [vmem:[%s4513_s5 + $0x1c0] sm:$0xff] }
 0x341   :  { %v2739_v22 = vpack.c.bf16 %v1072_v21, %v1070_v20  ;;  %v1092_v20 = vld [vmem:[%s4513_s5 + $0x270] sm:$0xff] }
 0x343   :  { %2704 = vmatpush1.bf16.msra.mxu0 %v2703_v25 }
 0x344   :  { %2706 = vmatprep.subr.bf16.mxu0 %v2705_v26 }
 0x347   :  { %2708 = vmatpush1.bf16.msra.mxu0 %v2707_v32  ;;  %v1076_v32 = vld [vmem:[%s4513_s5 + $0x1f0] sm:$0xff] }
 0x348   :  { %2710 = vmatprep.subr.bf16.mxu0 %v2709_v33  ;;  %v2743_v35 = vpack.c.bf16 %v1076_v32, %v1074_v31  ;;  %v1099_v32 = vld [vmem:[%s4513_s5 + $0x2a8] sm:$0xff] }
 0x34b   :  { %2712 = vmatpush1.bf16.msra.mxu0 %v2711_v38 }
 0x34c   :  { %2714 = vmatprep.subr.bf16.mxu0 %v2713_v39  ;;  %v1079_v39 = vld [vmem:[%s4513_s5 + $0x208] sm:$0xff] }
 0x34d   :  { %v2745_v43 = vpack.c.bf16 %v1081_v40, %v1079_v39  ;;  %v1103_v39 = vld [vmem:[%s4513_s5 + $0x2c8] sm:$0xff]  ;;  %v1105_v40 = vld [vmem:[%s4513_s5 + $0x2d8] sm:$0xff] }
 0x34f   :  { %2716 = vmatpush1.bf16.msra.mxu0 %v2715_v44 }
 0x350   :  { %2718 = vmatprep.subr.bf16.mxu0 %v2717_v45 }
 0x353   :  { %2720 = vmatpush1.bf16.msra.mxu0 %v2719_v50 }
 0x354   :  { %2722 = vmatprep.subr.bf16.mxu0 %v2721_v51 }
 0x357   :  { %2724 = vmatpush1.bf16.msra.mxu0 %v2723_v56  ;;  %v1085_v56 = vld [vmem:[%s4513_s5 + $0x238] sm:$0xff] }
 0x358   :  { %2726 = vmatprep.subr.bf16.mxu0 %v2725_v57  ;;  %v2747_v57 = vpack.c.bf16 %v1080_v53, %v1078_v52  ;;  %v2749_v60 = vpack.c.bf16 %v1085_v56, %v1083_v55  ;;  %v1111_v52 = vld [vmem:[%s4513_s5 + $0x308] sm:$0xff]  ;;  %v1113_v53 = vld [vmem:[%s4513_s5 + $0x318] sm:$0xff]  ;;  %v1110_v56 = vld [vmem:[%s4513_s5 + $0x300] sm:$0xff] }
 0x359   :  { %v2777_v55 = vpack.c.bf16 %v1113_v53, %v1111_v52  ;;  %v1148_v52 = vld [vmem:[%s4513_s5 + $0x430] sm:$0xf] }
 0x35b   :  { %2728 = vmatpush1.bf16.msra.mxu0 %v2727_v62  ;;  %v1084_v62 = vld [vmem:[%s4513_s5 + $0x230] sm:$0xff] }
 0x35c   :  { %2730 = vmatprep.subr.bf16.mxu0 %v2729_v63 }
 0x35f   :  { %2732 = vmatpush1.bf16.msra.mxu0 %v2731_v4  ;;  %v1089_v4 = vld [vmem:[%s4513_s5 + $0x258] sm:$0xff] }
 0x360   :  { %2734 = vmatprep.subr.bf16.mxu0 %v2733_v10  ;;  %v2753_v8 = vpack.c.bf16 %v1089_v4, %v1087_v1  ;;  %v1088_v10 = vld [vmem:[%s4513_s5 + $0x250] sm:$0xff]  ;;  %v1121_v1 = vld [vmem:[%s4513_s5 + $0x358] sm:$0xff] }
 0x363   :  { %2736 = vmatpush1.bf16.msra.mxu0 %v2735_v13  ;;  %v1093_v13 = vld [vmem:[%s4513_s5 + $0x278] sm:$0xff] }
 0x364   :  { %2738 = vmatprep.subr.bf16.mxu0 %v2737_v19  ;;  %v2757_v18 = vpack.c.bf16 %v1093_v13, %v1091_v12  ;;  %v1090_v19 = vld [vmem:[%s4513_s5 + $0x260] sm:$0xff] }
 0x365   :  { %v1122_v13 = vld [vmem:[%s4513_s5 + $0x360] sm:$0xff] }
 0x367   :  { %2740 = vmatpush1.bf16.msra.mxu0 %v2739_v22 }
 0x368   :  { %2742 = vmatprep.subr.bf16.mxu0 %v2741_v30  ;;  %v1096_v30 = vld [vmem:[%s4513_s5 + $0x290] sm:$0xff] }
 0x36b   :  { %2744 = vmatpush1.bf16.msra.mxu0 %v2743_v35 }
 0x36c   :  { %2746 = vmatprep.subr.bf16.mxu0 %v2745_v43  ;;  %v2769_v43 = vpack.c.bf16 %v1105_v40, %v1103_v39  ;;  %v1138_v39 = vld [vmem:[%s4513_s5 + $0x3e0] sm:$0xff]  ;;  %v1140_v40 = vld [vmem:[%s4513_s5 + $0x3f0] sm:$0xff] }
 0x401   :  { %v874_v6 = vpop.f32.mrb[4].mxu0 }
 0x402   :  { %v2309_v7 = vpop.f32.mrb[5].mxu0 }
 0x405   :  { %v879_v14 = vpop.f32.mrb[6].mxu0 }
 0x406   :  { %v2312_v15 = vpop.f32.mrb[7].mxu0  ;;  %v891_v24 = vrot.slane %v879_v14, 4 }
 0x409   :  { %v884_v23 = vpop.f32.mrb[8].mxu0 }
 0x40a   :  { %v892_v25 = vrot.slane %v884_v23, 4  ;;  %v2315_v26 = vpop.f32.mrb[9].mxu0  ;;  %v1095_v23 = vld [vmem:[%s4513_s5 + $0x288] sm:$0xff] }
 0x40c   :  { %v893_v33 = vsel %vm890_vm9, %v891_v24, %v892_v25  ;;  %v897_v34 = vmax.f32 %v879_v14, %v892_v25  ;;  %v2755_v14 = vpack.c.bf16 %v1088_v10, %v1086_v9  ;;  %v1097_v24 = vld [vmem:[%s4513_s5 + $0x298] sm:$0xff]  ;;  %v2759_v25 = vpack.c.bf16 %v1092_v20, %v1090_v19  ;;  %v1123_v9 = vld [vmem:[%s4513_s5 + $0x368] sm:$0xff]  ;;  %v1126_v20 = vld [vmem:[%s4513_s5 + $0x380] sm:$0xff] }
 0x40d   :  { %v896_v36 = vmax.f32 %v874_v6, %v893_v33  ;;  %v2751_v6 = vpack.c.bf16 %v1084_v62, %v1082_v61  ;;  %v2761_v28 = vpack.c.bf16 %v1097_v24, %v1095_v23  ;;  %v1101_v33 = vld [vmem:[%s4513_s5 + $0x2b8] sm:$0xff]  ;;  %v1114_v62 = vld [vmem:[%s4513_s5 + $0x320] sm:$0xff] }
 0x40e   :  { %v928_v37 = vrot.slane %v897_v34, 1  ;;  %v965_v38 = vrot.slane %v897_v34, 2  ;;  %901 = vst.msk [vmem:[#allocation3 + $0x28] sm:$0x3] %vm900_vm10, %v897_v34  ;;  %vm923_vm10 = vcmask 1042368   ;;  %v1125_v10 = vld [vmem:[%s4513_s5 + $0x378] sm:$0xff] }
 0x40f   :  { %914 = vrot.lane.b32.xlu0 %v896_v36, %s3053_s2  ;;  %v927_v41 = vrot.slane %v896_v36, 1  ;;  %v964_v42 = vrot.slane %v896_v36, 2  ;;  %899 = vst.msk [vmem:[#allocation3] sm:$0xff] %vm898_vm12, %v896_v36  ;;  %vm952_vm12 = vcmask 353280   ;;  %v2789_v12 = vpack.c.bf16 %v1125_v10, %v1123_v9  ;;  %v1133_v23 = vld [vmem:[%s4513_s5 + $0x3b8] sm:$0xff] }
 0x411   :  { %v929_v44 = vsel %vm202_vm5, %v927_v41, %v928_v37  ;;  %v966_v45 = vsel %vm75_vm1, %v964_v42, %v965_v38  ;;  %vm921_vm1 = vcmask 424960   ;;  %vm936_vm5 = vcmask 916896  }
 0x412   :  { %930 = vrot.lane.b32.xlu1 %v929_v44, %s3054_s3 }
 0x413   :  { %904 = vrot.lane.b32.xlu0 %v896_v36, %s3055_s26  ;;  %v2765_v36 = vpack.c.bf16 %v1101_v33, %v1099_v32  ;;  %v1134_v33 = vld [vmem:[%s4513_s5 + $0x3c0] sm:$0xff] }
 0x416   :  { %940 = vrot.lane.b32.xlu1 %v929_v44, %s3056_s27 }
 0x417   :  { %916 = vrot.lane.b32.xlu0 %v897_v34, %s3053_s2 }
 0x41a   :  { %932 = vrot.lane.b32.xlu1 %v928_v37, %s3054_s3 }
 0x41b   :  { %906 = vrot.lane.b32.xlu0 %v897_v34, %s3055_s26  ;;  %v2763_v34 = vpack.c.bf16 %v1096_v30, %v1094_v29  ;;  %v1135_v29 = vld [vmem:[%s4513_s5 + $0x3c8] sm:$0xff]  ;;  %v1137_v30 = vld [vmem:[%s4513_s5 + $0x3d8] sm:$0xff] }
 0x41c   :  { %v2801_v32 = vpack.c.bf16 %v1137_v30, %v1135_v29 }
 0x41e   :  { %942 = vrot.lane.b32.xlu1 %v928_v37, %s3056_s27 }
 0x41f   :  { %969 = vrot.lane.b32.xlu0 %v965_v38, %s3057_s28 }
 0x422   :  { %982 = vrot.lane.b32.xlu1 %v965_v38, %s3058_s29 }
 0x423   :  { %967 = vrot.lane.b32.xlu0 %v966_v45, %s3057_s28 }
 0x426   :  { %980 = vrot.lane.b32.xlu1 %v966_v45, %s3058_s29 }
 0x427   :  { %954 = vrot.lane.b32.xlu0 %v929_v44, %s3059_s30  ;;  %v1102_v44 = vld [vmem:[%s4513_s5 + $0x2c0] sm:$0xff] }
 0x42a   :  { %990 = vrot.lane.b32.xlu1 %v966_v45, %s3060_s15  ;;  %v1104_v45 = vld [vmem:[%s4513_s5 + $0x2d0] sm:$0xff] }
 0x42b   :  { %956 = vrot.lane.b32.xlu0 %v928_v37, %s3059_s30  ;;  %v1098_v37 = vld [vmem:[%s4513_s5 + $0x2a0] sm:$0xff] }
 0x42e   :  { %992 = vrot.lane.b32.xlu1 %v965_v38, %s3060_s15  ;;  %v1100_v38 = vld [vmem:[%s4513_s5 + $0x2b0] sm:$0xff] }
 0x42f   :  { %v2767_v41 = vpack.c.bf16 %v1100_v38, %v1098_v37 }
 0x481   :  { %v915_v46 = vpop.permute.xlu0 %914 }
 0x482   :  { %922 = vst.msk [vmem:[#allocation3 + $0x8] sm:$0xff] %vm921_vm1, %v915_v46  ;;  %vm978_vm1 = vcmask 287744  }
 0x484   :  { %v931_v47 = vpop.permute.xlu1 %930 }
 0x485   :  { %937 = vst.msk [vmem:[#allocation3 + $0x8] sm:$0xff] %vm936_vm5, %v931_v47  ;;  %v905_v48 = vpop.permute.xlu0 %904  ;;  %vm988_vm5 = vcmask 779552   ;;  %v1109_v47 = vld [vmem:[%s4513_s5 + $0x2f8] sm:$0xff] }
 0x486   :  { %911 = vst.msk [vmem:[#allocation3] sm:$0xff] %vm910_vm13, %v905_v48  ;;  %vm974_vm13 = vcmask 293888   ;;  %v2771_v48 = vpack.c.bf16 %v1104_v45, %v1102_v44  ;;  %v1142_v45 = vld [vmem:[%s4513_s5 + $0x400] sm:$0xff] }
 0x487   :  { %920 = vst.msk [vmem:[#allocation3] sm:$0xff] %vm286_vm15, %v915_v46  ;;  %vm950_vm15 = vcmask 1042304   ;;  %v1107_v46 = vld [vmem:[%s4513_s5 + $0x2e8] sm:$0xff] }
 0x488   :  { %v941_v49 = vpop.permute.xlu1 %940 }
 0x489   :  { %947 = vst.msk [vmem:[#allocation3 + $0x8] sm:$0xff] %vm946_vm0, %v941_v49  ;;  %v917_v50 = vpop.permute.xlu0 %916  ;;  %vm986_vm0 = vcmask 785696  }
 0x48a   :  { %949 = vst.msk [vmem:[#allocation3 + $0x10] sm:$0xff] %vm948_vm3, %v941_v49  ;;  %vm960_vm3 = vcmask 851296   ;;  %v2773_v49 = vpack.c.bf16 %v1109_v47, %v1107_v46  ;;  %v1144_v46 = vld [vmem:[%s4513_s5 + $0x410] sm:$0xff]  ;;  %v1147_v47 = vld [vmem:[%s4513_s5 + $0x428] sm:$0xff] }
 0x48b   :  { %926 = vst.msk [vmem:[#allocation3 + $0x30] sm:$0x3] %vm925_vm4, %v917_v50  ;;  %vm996_vm4 = vcmask 1048320  }
 0x48c   :  { %v933_v51 = vpop.permute.xlu1 %932 }
 0x48d   :  { %939 = vst.msk [vmem:[#allocation3 + $0x30] sm:$0x3] %vm938_vm7, %v933_v51  ;;  %v907_v54 = vpop.permute.xlu0 %906  ;;  %vm998_vm7 = vcmask 228352   ;;  %v1108_v51 = vld [vmem:[%s4513_s5 + $0x2f0] sm:$0xff] }
 0x48e   :  { %913 = vst.msk [vmem:[#allocation3 + $0x28] sm:$0x3] %vm912_vm8, %v907_v54  ;;  %v1004_v0 = vld [vmem:[#allocation3] sm:$0xff]  ;;  %vm962_vm8 = vcmask 845152  }
 0x48f   :  { %924 = vst.msk [vmem:[#allocation3 + $0x28] sm:$0x3] %vm923_vm10, %v917_v50  ;;  %vm976_vm10 = vcmask 1042240   ;;  %v1106_v50 = vld [vmem:[%s4513_s5 + $0x2e0] sm:$0xff] }
 0x490   :  { %v943_v58 = vpop.permute.xlu1 %942  ;;  %v1005_v59 = vld [vmem:[#allocation3 + $0x8] sm:$0xff]  ;;  %v2775_v54 = vpack.c.bf16 %v1108_v51, %v1106_v50  ;;  %v1146_v51 = vld [vmem:[%s4513_s5 + $0x420] sm:$0xff] }
 0x491   :  { %951 = vst.msk [vmem:[#allocation3 + $0x30] sm:$0x3] %vm950_vm15, %v943_v58  ;;  %v970_v63 = vpop.permute.xlu0 %969  ;;  %1238 = vmatprep.mubr.f32.mxu0 %v1005_v59  ;;  %vm1002_vm15 = vcmask 222208   ;;  %v1117_v59 = vld [vmem:[%s4513_s5 + $0x338] sm:$0xff] }
 0x492   :  { %953 = vst.msk [vmem:[#allocation3 + $0x38] sm:$0x3] %vm952_vm12, %v943_v58  ;;  %1239 = vmatmul.mubr.f32.vlgmr.msra.gmra.mrb[10].mxu0 %v1004_v0  ;;  %v1115_v58 = vld [vmem:[%s4513_s5 + $0x328] sm:$0xff]  ;;  %vm2814_vm12 = vmpackc.low %vm890_vm9, %vm3040_vm2 }
 0x493   :  { %979 = vst.msk [vmem:[#allocation3 + $0x40] sm:$0x3] %vm978_vm1, %v970_v63  ;;  %2748 = vmatpush1.bf16.msra.mxu0 %v2747_v57  ;;  %v1112_v57 = vld [vmem:[%s4513_s5 + $0x310] sm:$0xff]  ;;  %v2781_v61 = vpack.c.bf16 %v1117_v59, %v1115_v58  ;;  %v1119_v0 = vld [vmem:[%s4513_s5 + $0x348] sm:$0xff]  ;;  %v1150_v59 = vld [vmem:[%s4514_s6] sm:$0x3] }
 0x494   :  { %v983_v7 = vpop.permute.xlu1 %982  ;;  %2750 = vmatprep.subr.bf16.mxu0 %v2749_v60  ;;  %v2779_v60 = vpack.c.bf16 %v1112_v57, %v1110_v56  ;;  %vm1429_vm1 = vcmask 80896  }
 0x495   :  { %989 = vst.msk [vmem:[#allocation3 + $0x40] sm:$0x3] %vm988_vm5, %v983_v7  ;;  %v968_v11 = vpop.permute.xlu0 %967  ;;  %v1118_v7 = vld [vmem:[%s4513_s5 + $0x340] sm:$0xff]  ;;  %vm1436_vm5 = vcmask 1041408  }
 0x496   :  { %975 = vst.msk [vmem:[#allocation3 + $0x18] sm:$0xff] %vm974_vm13, %v968_v11  ;;  %v1009_v22 = vld [vmem:[#allocation3 + $0x28] sm:$0x3]  ;;  %vm2820_vm13 = vmpackc.low %vm1436_vm5, %vm3040_vm2  ;;  %vm1517_vm2 = vcmask 1042432  }
 0x497   :  { %2752 = vmatpush1.bf16.msra.mxu0 %v2751_v6  ;;  %v2785_v6 = vpack.c.bf16 %v1121_v1, %v1119_v0 }
 0x498   :  { %v981_v15 = vpop.permute.xlu1 %980  ;;  %v1010_v16 = vld [vmem:[#allocation3 + $0x30] sm:$0x3]  ;;  %2754 = vmatprep.subr.bf16.mxu0 %v2753_v8  ;;  %v1120_v8 = vld [vmem:[%s4513_s5 + $0x350] sm:$0xff] }
 0x499   :  { %987 = vst.msk [vmem:[#allocation3 + $0x18] sm:$0xff] %vm986_vm0, %v981_v15  ;;  %v955_v21 = vpop.permute.xlu0 %954  ;;  %1244 = vmatprep.mubr.f32.mxu0 %v1010_v16  ;;  %v1127_v15 = vld [vmem:[%s4513_s5 + $0x388] sm:$0xff]  ;;  %v1129_v16 = vld [vmem:[%s4513_s5 + $0x398] sm:$0xff]  ;;  %vm1962_vm0 = vcmask 982016  }
 0x49a   :  { %961 = vst.msk [vmem:[#allocation3 + $0x10] sm:$0xff] %vm960_vm3, %v955_v21  ;;  %1245 = vmatmul.mubr.f32.gmra.mrb[12].mxu0 %v1009_v22  ;;  %v2793_v19 = vpack.c.bf16 %v1129_v16, %v1127_v15  ;;  %v1128_v21 = vld [vmem:[%s4513_s5 + $0x390] sm:$0xff]  ;;  %v1131_v22 = vld [vmem:[%s4513_s5 + $0x3a8] sm:$0xff]  ;;  %v1611_v16 = vld [vmem:[%s4516_s8 + $0x60] sm:$0xff]  ;;  %vm2126_vm3 = vcmask 73728  }
 0x49b   :  { %973 = vst.msk [vmem:[#allocation3 + $0x10] sm:$0xff] %vm249_vm14, %v968_v11  ;;  %2756 = vmatpush1.bf16.msra.mxu0 %v2755_v14  ;;  %vm1000_vm14 = vcmask 1042176   ;;  %v2787_v11 = vpack.c.bf16 %v1120_v8, %v1118_v7  ;;  %v1124_v14 = vld [vmem:[%s4513_s5 + $0x370] sm:$0xff]  ;;  %v2795_v24 = vpack.c.bf16 %v1128_v21, %v1126_v20  ;;  %v1614_v21 = vld [vmem:[%s4516_s8 + $0x78] sm:$0xff] }
 0x49c   :  { %v991_v26 = vpop.permute.xlu1 %990  ;;  %2758 = vmatprep.subr.bf16.mxu0 %v2757_v18  ;;  %v2791_v18 = vpack.c.bf16 %v1124_v14, %v1122_v13  ;;  %v1427_v13 = vld [vmem:[%s4515_s7] sm:$0xff]  ;;  %v1610_v14 = vld [vmem:[%s4516_s8 + $0x58] sm:$0xff]  ;;  %v1613_v20 = vld [vmem:[%s4516_s8 + $0x70] sm:$0xff] }
 0x49d   :  { %997 = vst.msk [vmem:[#allocation3 + $0x18] sm:$0xff] %vm996_vm4, %v991_v26  ;;  %v957_v31 = vpop.permute.xlu0 %956 }
 0x49e   :  { %999 = vst.msk [vmem:[#allocation3 + $0x20] sm:$0xff] %vm998_vm7, %v991_v26  ;;  %v1130_v26 = vld [vmem:[%s4513_s5 + $0x3a0] sm:$0xff] }
 0x49f   :  { %963 = vst.msk [vmem:[#allocation3 + $0x38] sm:$0x3] %vm962_vm8, %v957_v31  ;;  %2760 = vmatpush1.bf16.msra.mxu0 %v2759_v25  ;;  %v2797_v25 = vpack.c.bf16 %v1133_v23, %v1131_v22  ;;  %v2847_v22 = vpack.c.bf16 %v1614_v21, %v1613_v20  ;;  %v1779_v20 = vld [vmem:[%s4516_s8 + $0x100] sm:$0xff]  ;;  %v1780_v21 = vld [vmem:[%s4516_s8 + $0x108] sm:$0xff] }
 0x4a0   :  { %977 = vst.msk [vmem:[#allocation3 + $0x38] sm:$0x3] %vm976_vm10, %v970_v63  ;;  %v993_v35 = vpop.permute.xlu1 %992  ;;  %2762 = vmatprep.subr.bf16.mxu0 %v2761_v28  ;;  %v1116_v63 = vld [vmem:[%s4513_s5 + $0x330] sm:$0xff] }
 0x4a1   :  { %1001 = vst.msk [vmem:[#allocation3 + $0x40] sm:$0x3] %vm1000_vm14, %v993_v35  ;;  %v2783_v4 = vpack.c.bf16 %v1116_v63, %v1114_v62  ;;  %v1132_v28 = vld [vmem:[%s4513_s5 + $0x3b0] sm:$0xff] }
 0x4a2   :  { %1003 = vst.msk [vmem:[#allocation3 + $0x48] sm:$0x3] %vm1002_vm15, %v993_v35  ;;  %v2799_v31 = vpack.c.bf16 %v1132_v28, %v1130_v26  ;;  %v1139_v35 = vld [vmem:[%s4513_s5 + $0x3e8] sm:$0xff]  ;;  %v1006_v53 = vld [vmem:[#allocation3 + $0x10] sm:$0xff] }
 0x4a3   :  { %2764 = vmatpush1.bf16.msra.mxu0 %v2763_v34  ;;  %v1136_v34 = vld [vmem:[%s4513_s5 + $0x3d0] sm:$0xff] }
 0x4a4   :  { %2766 = vmatprep.subr.bf16.mxu0 %v2765_v36  ;;  %v1007_v42 = vld [vmem:[#allocation3 + $0x18] sm:$0xff]  ;;  %v1141_v36 = vld [vmem:[%s4513_s5 + $0x3f8] sm:$0xff]  ;;  %v2803_v37 = vpack.c.bf16 %v1136_v34, %v1134_v33 }
 0x4a5   :  { %1315 = vmatprep.mubr.f32.mxu0 %v1007_v42  ;;  %v2805_v38 = vpack.c.bf16 %v1141_v36, %v1139_v35  ;;  %v1145_v42 = vld [vmem:[%s4513_s5 + $0x418] sm:$0xff]  ;;  %v1008_v57 = vld [vmem:[#allocation3 + $0x20] sm:$0xff]  ;;  %v1524_v35 = vld [vmem:[%s4516_s8] sm:$0xff] }
 0x4a6   :  { %v1525_v36 = vld [vmem:[%s4516_s8 + $0x8] sm:$0xff] }
 0x4a7   :  { %2768 = vmatpush1.bf16.msra.mxu0 %v2767_v41  ;;  %v1143_v41 = vld [vmem:[%s4513_s5 + $0x408] sm:$0xff] }
 0x4a8   :  { %2770 = vmatprep.subr.bf16.mxu0 %v2769_v43  ;;  %v2807_v43 = vpack.c.bf16 %v1140_v40, %v1138_v39  ;;  %v2809_v44 = vpack.c.bf16 %v1145_v42, %v1143_v41  ;;  %v1011_v56 = vld [vmem:[#allocation3 + $0x38] sm:$0x3]  ;;  %v1526_v39 = vld [vmem:[%s4516_s8 + $0x10] sm:$0xff]  ;;  %v1527_v40 = vld [vmem:[%s4516_s8 + $0x18] sm:$0xff] }
 0x4a9   :  { %v1013_v58 = vld [vmem:[#allocation3 + $0x48] sm:$0x3]  ;;  %v2829_v41 = vpack.c.bf16 %v1527_v40, %v1526_v39  ;;  %v1528_v42 = vld [vmem:[%s4516_s8 + $0x20] sm:$0xff] }
 0x4aa   :  { %v1865_v40 = vld [vmem:[%s4516_s8 + $0x160] sm:$0xff] }
 0x4ab   :  { %2772 = vmatpush1.bf16.msra.mxu0 %v2771_v48  ;;  %v1149_v48 = vld [vmem:[%s4513_s5 + $0x438] sm:$0xf] }
 0x4ac   :  { %2774 = vmatprep.subr.bf16.mxu0 %v2773_v49  ;;  %v2811_v49 = vpack.c.bf16 %v1144_v46, %v1142_v45  ;;  %v2813_v50 = vpack.c.bf16 %v1149_v48, %v1147_v47  ;;  %v1530_v45 = vld [vmem:[%s4516_s8 + $0x30] sm:$0xff]  ;;  %v1531_v46 = vld [vmem:[%s4516_s8 + $0x38] sm:$0xff]  ;;  %v1615_v48 = vld [vmem:[%s4516_s8 + $0x80] sm:$0xff] }
 0x4ad   :  { %v2835_v47 = vpack.c.bf16 %v1531_v46, %v1530_v45  ;;  %v1869_v46 = vld [vmem:[%s4516_s8 + $0x180] sm:$0xff] }
 0x4af   :  { %2776 = vmatpush1.bf16.msra.mxu0 %v2775_v54  ;;  %v1012_v54 = vld [vmem:[#allocation3 + $0x40] sm:$0x3] }
 0x4b0   :  { %2778 = vmatprep.subr.bf16.mxu0 %v2777_v55  ;;  %v2816_v55 = vpack.c.bf16 %v1148_v52, %v1146_v51  ;;  %v1532_v51 = vld [vmem:[%s4516_s8 + $0x40] sm:$0xff]  ;;  %v1533_v52 = vld [vmem:[%s4516_s8 + $0x48] sm:$0xff] }
 0x4b3   :  { %2780 = vmatpush1.bf16.msra.mxu0 %v2779_v60  ;;  %v1155_v60 = vrot.slane %v1150_v59, %v495_v3 }
 0x4b4   :  { %2782 = vmatprep.subr.bf16.mxu0 %v2781_v61  ;;  %v1159_v61 = vrot.slane %v1150_v59, %v499_v5  ;;  %v1609_v5 = vld [vmem:[%s4516_s8 + $0x50] sm:$0xff] }
 0x4b5   :  { %v2841_v15 = vpack.c.bf16 %v1610_v14, %v1609_v5  ;;  %v1702_v5 = vld [vmem:[%s4516_s8 + $0xe8] sm:$0xff] }
 0x4b7   :  { %2784 = vmatpush1.bf16.msra.mxu0 %v2783_v4  ;;  %2842 = vmatpush3.bf16.msra.mxu1 %v2841_v15  ;;  %v1777_v15 = vld [vmem:[%s4516_s8 + $0xf0] sm:$0xff] }
 0x4b8   :  { %2786 = vmatprep.subr.bf16.mxu0 %v2785_v6  ;;  %2843 = vmatprep.subr.bf16.mxu1 %v3049_v17 }
 0x4bb   :  { %2788 = vmatpush1.bf16.msra.mxu0 %v2787_v11 }
 0x4bc   :  { %2790 = vmatprep.subr.bf16.mxu0 %v2789_v12 }
 0x4bf   :  { %2792 = vmatpush1.bf16.msra.mxu0 %v2791_v18  ;;  %v1612_v18 = vld [vmem:[%s4516_s8 + $0x68] sm:$0xff] }
 0x4c0   :  { %2794 = vmatprep.subr.bf16.mxu0 %v2793_v19  ;;  %v2844_v19 = vpack.c.bf16 %v1612_v18, %v1611_v16  ;;  %v1778_v16 = vld [vmem:[%s4516_s8 + $0xf8] sm:$0xff] }
 0x4c1   :  { %v2871_v18 = vpack.c.bf16 %v1778_v16, %v1777_v15 }
 0x4c2   :  { %2845 = vmatpush3.bf16.msra.mxu1 %v2844_v19 }
 0x4c3   :  { %2796 = vmatpush1.bf16.msra.mxu0 %v2795_v24  ;;  %2846 = vmatprep.subr.bf16.mxu1 %v3049_v17 }
 0x4c4   :  { %2798 = vmatprep.subr.bf16.mxu0 %v2797_v25 }
 0x4c6   :  { %2848 = vmatpush3.bf16.msra.mxu1 %v2847_v22  ;;  %v2874_v22 = vpack.c.bf16 %v1780_v21, %v1779_v20  ;;  %v2039_v20 = vld [vmem:[%s4520_s12 + $0x10] sm:$0xff]  ;;  %v2040_v21 = vld [vmem:[%s4520_s12 + $0x18] sm:$0xff] }
 0x4c7   :  { %2800 = vmatpush1.bf16.msra.mxu0 %v2799_v31  ;;  %2849 = vmatprep.subr.bf16.mxu1 %v3049_v17 }
 0x4c8   :  { %2802 = vmatprep.subr.bf16.mxu0 %v2801_v32 }
 0x4cb   :  { %2804 = vmatpush1.bf16.msra.mxu0 %v2803_v37  ;;  %v1428_v37 = vld [vmem:[%s4515_s7 + $0x8] sm:$0x3] }
 0x4cc   :  { %2806 = vmatprep.subr.bf16.mxu0 %v2805_v38  ;;  %v2826_v38 = vpack.c.bf16 %v1525_v36, %v1524_v35 }
 0x4cf   :  { %2808 = vmatpush1.bf16.msra.mxu0 %v2807_v43  ;;  %v1529_v43 = vld [vmem:[%s4516_s8 + $0x28] sm:$0xff] }
 0x4d0   :  { %2810 = vmatprep.subr.bf16.mxu0 %v2809_v44  ;;  %v2832_v44 = vpack.c.bf16 %v1529_v43, %v1528_v42  ;;  %v1867_v43 = vld [vmem:[%s4516_s8 + $0x170] sm:$0xff] }
 0x4d2   :  { %1316 = vmatmul.mubr.f32.vlgmr.msra.gmra.mrb[10].mxu0 %v1006_v53  ;;  %v2838_v53 = vpack.c.bf16 %v1533_v52, %v1532_v51  ;;  %v1947_v51 = vld [vmem:[%s4518_s10 + $0x8] sm:$0xff]  ;;  %v1948_v52 = vld [vmem:[%s4518_s10 + $0x10] sm:$0xff] }
 0x4d3   :  { %1321 = vmatprep.mubr.f32.mxu0 %v1012_v54  ;;  %2812 = vmatpush1.bf16.msra.mxu0 %v2811_v49  ;;  %v1616_v49 = vld [vmem:[%s4516_s8 + $0x88] sm:$0xff]  ;;  %v1617_v54 = vld [vmem:[%s4516_s8 + $0x90] sm:$0xff] }
 0x4d4   :  { %2815 = vmatprep.subr.msk.bf16.mxu0 %vm2814_vm12, %v2813_v50  ;;  %v2850_v50 = vpack.c.bf16 %v1616_v49, %v1615_v48 }
 0x4d6   :  { %1322 = vmatmul.mubr.f32.gmra.mrb[12].mxu0 %v1011_v56  ;;  %2851 = vmatpush3.bf16.msra.mxu1 %v2850_v50  ;;  %v1946_v50 = vld [vmem:[%s4518_s10] sm:$0xff] }
 0x4d7   :  { %2818 = vmatpush1.bf16.msk.msra.mxu0 %vm2814_vm12, %v2816_v55  ;;  %1392 = vmatprep.mubr.f32.mxu0 %v3052_v27  ;;  %v1618_v55 = vld [vmem:[%s4516_s8 + $0x98] sm:$0xff] }
 0x4d8   :  { %2852 = vmatprep.subr.bf16.mxu1 %v3049_v17  ;;  %v2853_v56 = vpack.c.bf16 %v1618_v55, %v1617_v54  ;;  %v1949_v54 = vld [vmem:[%s4518_s10 + $0x18] sm:$0xff] }
 0x4d9   :  { %v2904_v55 = vpack.c.bf16 %v1949_v54, %v1948_v52 }
 0x4da   :  { %2155 = vmatmul.mubr.msk.f32.vlgmr.msra.gmra.mrb[10].mxu0 %vm998_vm7, %v1008_v57  ;;  %2854 = vmatpush3.bf16.msra.mxu1 %v2853_v56  ;;  %v1950_v56 = vld [vmem:[%s4518_s10 + $0x20] sm:$0xff] }
 0x4db   :  { %1398 = vmatprep.mubr.f32.mxu0 %v3052_v27  ;;  %2855 = vmatprep.subr.bf16.mxu1 %v3049_v17 }
 0x4de   :  { %2156 = vmatmul.mubr.msk.f32.gmra.mrb[12].mxu0 %vm998_vm7, %v1013_v58 }
 0x4df   :  { %2320 = vmatprep.mubr.msk.f32.mxu0 %vm1429_vm1, %v1427_v13  ;;  %v1700_v13 = vld [vmem:[%s4516_s8 + $0xd8] sm:$0xff] }
 0x5ad   :  { %v1394_v62 = vpop.f32.mrb[10].mxu0 }
 0x5ae   :  { %v2942_v63 = vadd.f32 %v1394_v62, %v1155_v60  ;;  %v1396_v0 = vpop.f32.mrb[11].mxu0  ;;  %v1694_v62 = vld [vmem:[%s4516_s8 + $0xa8] sm:$0xff] }
 0x5af   :  { %v2943_v1 = vadd.f32 %v1396_v0, %v1159_v61 }
 0x5b0   :  { %v1405_v4 = vmax.f32 %v2942_v63, 0.0 }
 0x5b1   :  { %v1406_v6 = vmax.f32 %v2943_v1, 0.0  ;;  %v1400_v7 = vpop.f32.mrb[12].mxu0 }
 0x5b2   :  { %v2944_v8 = vadd.f32 %v1400_v7, %v1155_v60  ;;  %v1402_v9 = vpop.f32.mrb[13].mxu0  ;;  %v1696_v7 = vld [vmem:[%s4516_s8 + $0xb8] sm:$0xff] }
 0x5b3   :  { %v3006_v10 = vpack.i.bf16 %v1406_v6, %v1405_v4  ;;  %v2945_v11 = vadd.f32 %v1402_v9, %v1159_v61  ;;  %v1693_v61 = vld [vmem:[%s4516_s8 + $0xa0] sm:$0xff]  ;;  %v1695_v6 = vld [vmem:[%s4516_s8 + $0xb0] sm:$0xff] }
 0x5b4   :  { %v1407_v12 = vmax.f32 %v2944_v8, 0.0  ;;  %v2856_v1 = vpack.c.bf16 %v1694_v62, %v1693_v61  ;;  %v2859_v8 = vpack.c.bf16 %v1696_v7, %v1695_v6  ;;  %v1697_v9 = vld [vmem:[%s4516_s8 + $0xc0] sm:$0xff] }
 0x5b5   :  { %v1408_v3 = vmax.f32 %v2945_v11, 0.0  ;;  %3007 = vrot.lane.b32.xlu0 %v3006_v10, %s3044_s16  ;;  %v1698_v10 = vld [vmem:[%s4516_s8 + $0xc8] sm:$0xff]  ;;  %v1954_v62 = vld [vmem:[%s4518_s10 + $0x40] sm:$0xff] }
 0x5b6   :  { %v2862_v11 = vpack.c.bf16 %v1698_v10, %v1697_v9  ;;  %v1958_v7 = vld [vmem:[%s4518_s10 + $0x60] sm:$0xff]  ;;  %v1960_v10 = vld [vmem:[%s4518_s10 + $0x70] sm:$0xff] }
 0x5b7   :  { %v3011_v2 = vpack.i.bf16 %v1408_v3, %v1407_v12 }
 0x5b9   :  { %3012 = vrot.lane.b32.xlu1 %v3011_v2, %s3044_s16  ;;  %v1701_v2 = vld [vmem:[%s4516_s8 + $0xe0] sm:$0xff] }
 0x5ba   :  { %v2868_v14 = vpack.c.bf16 %v1702_v5, %v1701_v2  ;;  %v2037_v2 = vld [vmem:[%s4520_s12] sm:$0xff]  ;;  %v2038_v5 = vld [vmem:[%s4520_s12 + $0x8] sm:$0xff] }
 0x627   :  { %v3008_v23 = vpop.permute.xlu0 %3007 }
 0x628   :  { %v3010_v24 = vunpack.i.h.bf16 %v3008_v23  ;;  %v3009_v25 = vunpack.i.l.bf16 %v3008_v23  ;;  %v1781_v23 = vld [vmem:[%s4516_s8 + $0x110] sm:$0xff] }
 0x62a   :  { %v1421_v28 = vsel %vm251_vm11, %v3009_v25, %v3010_v24  ;;  %v1782_v24 = vld [vmem:[%s4516_s8 + $0x118] sm:$0xff] }
 0x62b   :  { %v3013_v26 = vpop.permute.xlu1 %3012  ;;  %v1425_v32 = vmax.f32 %v1405_v4, %v1421_v28  ;;  %v2877_v25 = vpack.c.bf16 %v1782_v24, %v1781_v23  ;;  %v1784_v28 = vld [vmem:[%s4516_s8 + $0x128] sm:$0xff]  ;;  %v2041_v23 = vld [vmem:[%s4520_s12 + $0x20] sm:$0xff] }
 0x62c   :  { %v3015_v29 = vunpack.i.h.bf16 %v3013_v26  ;;  %v3014_v30 = vunpack.i.l.bf16 %v3013_v26  ;;  %v1783_v26 = vld [vmem:[%s4516_s8 + $0x120] sm:$0xff]  ;;  %v2042_v24 = vld [vmem:[%s4520_s12 + $0x28] sm:$0xff] }
 0x62e   :  { %v1422_v31 = vsel %vm251_vm11, %v3014_v30, %v3015_v29  ;;  %vm1534_vm11 = vcmask 654336   ;;  %v2880_v29 = vpack.c.bf16 %v1784_v28, %v1783_v26  ;;  %v1785_v30 = vld [vmem:[%s4516_s8 + $0x130] sm:$0xff]  ;;  %v2044_v28 = vld [vmem:[%s4520_s12 + $0x38] sm:$0xff] }
 0x62f   :  { %v1426_v33 = vmax.f32 %v1407_v12, %v1422_v31  ;;  %v1699_v12 = vld [vmem:[%s4516_s8 + $0xd0] sm:$0xff]  ;;  %v1786_v31 = vld [vmem:[%s4516_s8 + $0x138] sm:$0xff] }
 0x630   :  { %v2865_v3 = vpack.c.bf16 %v1700_v13, %v1699_v12  ;;  %v1523_v13 = vld [vmem:[%s4517_s9] sm:$0x1]  ;;  %v2043_v26 = vld [vmem:[%s4520_s12 + $0x30] sm:$0xff] }
 0x631   :  { %v2819_v34 = vpack.c.bf16 %v1426_v33, %v1425_v32  ;;  %v2883_v32 = vpack.c.bf16 %v1786_v31, %v1785_v30  ;;  %v1861_v33 = vld [vmem:[%s4516_s8 + $0x140] sm:$0xff]  ;;  %v2046_v31 = vld [vmem:[%s4520_s12 + $0x48] sm:$0xff] }
 0x632   :  { %v2045_v30 = vld [vmem:[%s4520_s12 + $0x40] sm:$0xff] }
 0x633   :  { %2821 = vmatprep.subr.msk.bf16.mxu0 %vm2820_vm13, %v2819_v34 }
 0x634   :  { %2824 = vmatpush3.bf16.msk.msra.mxu0 %vm2820_vm13, %v2819_v34  ;;  %v1862_v34 = vld [vmem:[%s4516_s8 + $0x148] sm:$0xff] }
 0x635   :  { %2825 = vmatprep.subr.bf16.mxu0 %v3049_v17  ;;  %v2886_v35 = vpack.c.bf16 %v1862_v34, %v1861_v33  ;;  %v2047_v33 = vld [vmem:[%s4520_s12 + $0x50] sm:$0xf] }
 0x637   :  { %2321 = vmatmul.mubr.msk.f32.vlgmr.msra.gmra.mrb[14].mxu0 %vm1429_vm1, %v1428_v37  ;;  %v1863_v37 = vld [vmem:[%s4516_s8 + $0x150] sm:$0xff] }
 0x638   :  { %2827 = vmatpush3.bf16.msra.mxu0 %v2826_v38  ;;  %2343 = vmatprep.mubr.msk.f32.mxu0 %vm3051_vm6, %v3052_v27  ;;  %v1864_v38 = vld [vmem:[%s4516_s8 + $0x158] sm:$0xff] }
 0x639   :  { %2828 = vmatprep.subr.bf16.mxu0 %v3049_v17  ;;  %v2889_v39 = vpack.c.bf16 %v1864_v38, %v1863_v37 }
 0x63c   :  { %2830 = vmatpush3.bf16.msra.mxu0 %v2829_v41  ;;  %v1866_v41 = vld [vmem:[%s4516_s8 + $0x168] sm:$0xff] }
 0x63d   :  { %2831 = vmatprep.subr.bf16.mxu0 %v3049_v17  ;;  %v2892_v42 = vpack.c.bf16 %v1866_v41, %v1865_v40 }
 0x640   :  { %2833 = vmatpush3.bf16.msra.mxu0 %v2832_v44  ;;  %v1868_v44 = vld [vmem:[%s4516_s8 + $0x178] sm:$0xff] }
 0x641   :  { %2834 = vmatprep.subr.bf16.mxu0 %v3049_v17  ;;  %v2895_v45 = vpack.c.bf16 %v1868_v44, %v1867_v43 }
 0x644   :  { %2836 = vmatpush3.bf16.msra.mxu0 %v2835_v47  ;;  %v1870_v47 = vld [vmem:[%s4516_s8 + $0x188] sm:$0xff]  ;;  %s3061_s8 = smov [#allocation4]  }
 0x645   :  { %2837 = vmatprep.subr.bf16.mxu0 %v3049_v17  ;;  %v2898_v48 = vpack.c.bf16 %v1870_v47, %v1869_v46  ;;  %s2134_s3 = sshll.u32 %s3061_s8, 4  ;;  %s2135_s3 = int_to_ptr.vmem [resolvable:$true] %s2134_s3 }
 0x646   :  { %s3016_s12 = scalar_lea.vmem %s2135_s3, 16  ;;  %p3021_p1 = scmp.lt.s32.totalorder %s2135_s3, %s2135_s3 }
 0x647   :  { %p3017_p0 = scmp.ne.s32.totalorder %s2135_s3, %s3016_s12 }
 0x648   :  { %2839 = vmatpush3.bf16.msra.mxu0 %v2838_v53  ;;  %v2901_v53 = vpack.c.bf16 %v1947_v51, %v1946_v50 }
 0x649   :  { %2900 = vmatprep.subr.bf16.mxu0 %v3049_v17 }
 0x70a   :  { %v2322_v57 = vpop.f32.mrb[14].mxu0 }
 0x70b   :  { %v1519_v58 = vrot.slane %v2322_v57, 5  ;;  %v1506_v59 = vpop.f32.mrb[15].mxu0  ;;  %v1951_v57 = vld [vmem:[%s4518_s10 + $0x28] sm:$0xff] }
 0x70c   :  { %v1518_v60 = vrot.slane %v1506_v59, 5 }
 0x70e   :  { %v1520_v63 = vsel %vm1517_vm2, %v1518_v60, %v1519_v58  ;;  %v2907_v58 = vpack.c.bf16 %v1951_v57, %v1950_v56  ;;  %v1953_v60 = vld [vmem:[%s4518_s10 + $0x38] sm:$0xff] }
 0x70f   :  { %v4275_v0 = vmax.f32 %v1506_v59, %v1520_v63  ;;  %v1952_v59 = vld [vmem:[%s4518_s10 + $0x30] sm:$0xff]  ;;  %v1955_v63 = vld [vmem:[%s4518_s10 + $0x48] sm:$0xff] }
 0x710   :  { %v2910_v61 = vpack.c.bf16 %v1953_v60, %v1952_v59 }
 0x711   :  { %v1619_v4 = vrot.slane %v4275_v0, 1  ;;  %2344 = vmatmul.mubr.msk.f32.vlgmr.msra.gmra.mrb[16].mxu0 %vm1534_vm11, %v4275_v0  ;;  %v1703_v19 = vrot.slane %v4275_v0, 2  ;;  %v1787_v36 = vrot.slane %v4275_v0, 3  ;;  %v1871_v49 = vrot.slane %v4275_v0, 4 }
 0x712   :  { %2468 = vmatprep.mubr.msk.f32.mxu0 %vm3051_vm6, %v3052_v27  ;;  %2902 = vmatpush3.bf16.msra.mxu0 %v2901_v53  ;;  %v2913_v0 = vpack.c.bf16 %v1955_v63, %v1954_v62 }
 0x713   :  { %2367 = vmatmul.mubr.msk.f32.vlgmr.msra.gmra.mrb[6].mxu1 %vm1534_vm11, %v1619_v4  ;;  %2903 = vmatprep.subr.bf16.mxu0 %v3049_v17  ;;  %v1957_v4 = vld [vmem:[%s4518_s10 + $0x58] sm:$0xff] }
 0x714   :  { %2857 = vmatpush3.bf16.msra.mxu1 %v2856_v1  ;;  %2389 = vmatprep.mubr.msk.f32.mxu1 %vm3051_vm6, %v3052_v27  ;;  %v1956_v1 = vld [vmem:[%s4518_s10 + $0x50] sm:$0xff] }
 0x715   :  { %2858 = vmatprep.subr.bf16.mxu1 %v3049_v17  ;;  %v2916_v6 = vpack.c.bf16 %v1957_v4, %v1956_v1 }
 0x716   :  { %2905 = vmatpush3.bf16.msra.mxu0 %v2904_v55 }
 0x717   :  { %2906 = vmatprep.subr.bf16.mxu0 %v3049_v17 }
 0x718   :  { %2860 = vmatpush3.bf16.msra.mxu1 %v2859_v8  ;;  %v1959_v8 = vld [vmem:[%s4518_s10 + $0x68] sm:$0xff] }
 0x719   :  { %2861 = vmatprep.subr.bf16.mxu1 %v3049_v17  ;;  %v2919_v9 = vpack.c.bf16 %v1959_v8, %v1958_v7 }
 0x71a   :  { %2908 = vmatpush3.bf16.msra.mxu0 %v2907_v58 }
 0x71b   :  { %2909 = vmatprep.subr.bf16.mxu0 %v3049_v17 }
 0x71c   :  { %2863 = vmatpush3.bf16.msra.mxu1 %v2862_v11 }
 0x71d   :  { %2864 = vmatprep.subr.bf16.mxu1 %v3049_v17 }
 0x71e   :  { %2911 = vmatpush3.bf16.msra.mxu0 %v2910_v61 }
 0x71f   :  { %2912 = vmatprep.subr.bf16.mxu0 %v3049_v17 }
 0x720   :  { %2866 = vmatpush3.bf16.msra.mxu1 %v2865_v3 }
 0x721   :  { %2867 = vmatprep.subr.bf16.mxu1 %v3049_v17 }
 0x722   :  { %2914 = vmatpush3.bf16.msra.mxu0 %v2913_v0 }
 0x723   :  { %2915 = vmatprep.subr.bf16.mxu0 %v3049_v17 }
 0x724   :  { %2869 = vmatpush3.bf16.msra.mxu1 %v2868_v14 }
 0x725   :  { %2870 = vmatprep.subr.bf16.mxu1 %v3049_v17 }
 0x726   :  { %2917 = vmatpush3.bf16.msra.mxu0 %v2916_v6 }
 0x727   :  { %2390 = vmatmul.mubr.msk.f32.vlgmr.msra.gmra.mrb[6].mxu1 %vm1534_vm11, %v1703_v19  ;;  %2918 = vmatprep.subr.bf16.mxu0 %v3049_v17 }
 0x728   :  { %2872 = vmatpush3.bf16.msra.mxu1 %v2871_v18  ;;  %2412 = vmatprep.mubr.msk.f32.mxu1 %vm3051_vm6, %v3052_v27  ;;  %v2922_v18 = vpack.c.bf16 %v2038_v5, %v2037_v2 }
 0x729   :  { %2873 = vmatprep.subr.bf16.mxu1 %v3049_v17 }
 0x72a   :  { %2920 = vmatpush3.bf16.msra.mxu0 %v2919_v9 }
 0x72b   :  { %2466 = vmatprep.subr.mxu0 %v3052_v27 }
 0x72c   :  { %2875 = vmatpush3.bf16.msra.mxu1 %v2874_v22  ;;  %v2925_v22 = vpack.c.bf16 %v2040_v21, %v2039_v20 }
 0x72d   :  { %2876 = vmatprep.subr.bf16.mxu1 %v3049_v17 }
 0x72e   :  { %2467 = vmatpush3.msra.mxu0 %v1960_v10 }
 0x72f   :  { %2921 = vmatprep.subr.bf16.mxu0 %v3049_v17 }
 0x730   :  { %2878 = vmatpush3.bf16.msra.mxu1 %v2877_v25  ;;  %v2928_v25 = vpack.c.bf16 %v2042_v24, %v2041_v23 }
 0x731   :  { %2879 = vmatprep.subr.bf16.mxu1 %v3049_v17 }
 0x734   :  { %2881 = vmatpush3.bf16.msra.mxu1 %v2880_v29  ;;  %v2931_v29 = vpack.c.bf16 %v2044_v28, %v2043_v26 }
 0x735   :  { %2882 = vmatprep.subr.bf16.mxu1 %v3049_v17 }
 0x738   :  { %2884 = vmatpush3.bf16.msra.mxu1 %v2883_v32  ;;  %v2934_v32 = vpack.c.bf16 %v2046_v31, %v2045_v30 }
 0x739   :  { %2885 = vmatprep.subr.bf16.mxu1 %v3049_v17 }
 0x73b   :  { %2413 = vmatmul.mubr.msk.f32.vlgmr.msra.gmra.mrb[6].mxu1 %vm1534_vm11, %v1787_v36 }
 0x73c   :  { %2887 = vmatpush3.bf16.msra.mxu1 %v2886_v35  ;;  %2435 = vmatprep.mubr.msk.f32.mxu1 %vm3051_vm6, %v3052_v27 }
 0x73d   :  { %2888 = vmatprep.subr.bf16.mxu1 %v3049_v17 }
 0x740   :  { %2890 = vmatpush3.bf16.msra.mxu1 %v2889_v39 }
 0x741   :  { %2891 = vmatprep.subr.bf16.mxu1 %v3049_v17 }
 0x744   :  { %2893 = vmatpush3.bf16.msra.mxu1 %v2892_v42 }
 0x745   :  { %2894 = vmatprep.subr.bf16.mxu1 %v3049_v17 }
 0x748   :  { %2896 = vmatpush3.bf16.msra.mxu1 %v2895_v45 }
 0x749   :  { %2897 = vmatprep.subr.bf16.mxu1 %v3049_v17 }
 0x74c   :  { %2899 = vmatpush3.bf16.msra.mxu1 %v2898_v48 }
 0x74f   :  { %2436 = vmatmul.mubr.msk.f32.vlgmr.msra.gmra.mrb[6].mxu1 %vm1534_vm11, %v1871_v49 }
 0x7e4   :  { %v1604_v11 = vpop.f32.mrb[16].mxu0 }
 0x7e5   :  { %v2345_v12 = vpop.f32.mrb[17].mxu0  ;;  %v1608_v3 = vadd.f32 %v1604_v11, %v1523_v13 }
 0x822   :  { %v1940_v14 = vpop.f32.mrb[6].mxu1 }
 0x823   :  { %v2947_v15 = vadd.f32 %v1940_v14, %v1608_v3  ;;  %v2437_v16 = vpop.f32.mrb[7].mxu1 }
 0x825   :  { %v1945_v19 = vmax.f32 %v2947_v15, 0.0 }
 0x827   :  { %2469 = vmatmul.mubr.msk.f32.vlgmr.msra.gmra.mrb[18].mxu0 %vm1962_vm0, %v1945_v19 }
 0x828   :  { %2923 = vmatpush3.bf16.msra.mxu0 %v2922_v18  ;;  %2493 = vmatprep.mubr.msk.f32.mxu0 %vm3051_vm6, %v3052_v27  ;;  %vm2049_vm6 = vcmask 687104  }
 0x829   :  { %2924 = vmatprep.subr.bf16.mxu0 %v3049_v17 }
 0x82c   :  { %2926 = vmatpush3.bf16.msra.mxu0 %v2925_v22 }
 0x82d   :  { %2927 = vmatprep.subr.bf16.mxu0 %v3049_v17 }
 0x830   :  { %2929 = vmatpush3.bf16.msra.mxu0 %v2928_v25 }
 0x831   :  { %2930 = vmatprep.subr.bf16.mxu0 %v3049_v17 }
 0x834   :  { %2932 = vmatpush3.bf16.msra.mxu0 %v2931_v29 }
 0x835   :  { %2933 = vmatprep.subr.bf16.mxu0 %v3049_v17  ;;  %v1961_v17 = vld [vmem:[%s4519_s11] sm:$0x1]  ;;  %s3020_s11 = scalar_lea.vmem %s2135_s3, 32 }
 0x836   :  { %p3022_p2 = scmp.lt.s32.totalorder %s3020_s11, %s3016_s12 }
 0x838   :  { %2935 = vmatpush3.bf16.msra.mxu0 %v2934_v32  ;;  %p3023_p3 = por %p3022_p2, %p3021_p1 }
 0x839   :  { %2491 = vmatprep.subr.mxu0 %v3052_v27  ;;  %v2048_v27 = vld [vmem:[%s4521_s13] sm:$0x1] }
 0x83a   :  { %p3024_p4 = pnand %p3023_p3, %p3017_p0 }
 0x83c   :  { %2492 = vmatpush3.msk.msra.mxu0 %vm890_vm9, %v2047_v33 }
 0x8fa   :  { %v2032_v34 = vpop.f32.mrb[18].mxu0 }
 0x8fb   :  { %v2033_v35 = vadd.f32 %v2032_v34, %v1961_v17  ;;  %v2470_v36 = vpop.f32.mrb[19].mxu0 }
 0x8fd   :  { %v2036_v37 = vmax.f32 %v2033_v35, 0.0 }
 0x8ff   :  { %2494 = vmatmul.mubr.msk.f32.vlgmr.msra.gmra.mrb[20].mxu0 %vm2049_vm6, %v2036_v37 }
 0x9d2   :  { %v2122_v38 = vpop.f32.mrb[20].mxu0 }
 0x9d3   :  { %v2123_v39 = vadd.f32 %v2122_v38, %v2048_v27  ;;  %v2495_v40 = vpop.f32.mrb[21].mxu0 }
 0x9d5   :  { %2127 = vst.msk [vmem:[#allocation4] sm:$0x1] %vm2126_vm3, %v2123_v39 }
 0x9d6   :  { %3027 = shalt.err (!%p3024_p4)
}
 0x9d7   :  { %s3028_s13 = scalar_lea.hbm %s4522_s14, 16 }
 0x9d8   :  { %p3029_p5 = scmp.ne.s32.totalorder %s4522_s14, %s3028_s13  ;;  %p3032_p6 = scmp.lt.u32.totalorder %s3028_s13, %s4522_s14 }
 0x9da   :  { %p3034_p7 = pnand %p3032_p6, %p3029_p5 }
 0x9dc   :  { %3037 = shalt.err (!%p3034_p7)
}
 0x9dd   :  { %2137 = dma.vmem_to_hbm [thread:$0]  %s2135_s3, 16, %s4522_s14, [#allocation5]  }
 0x9de   :  { %3038 = dma.done.wait [#allocation5], 16  }
 0x9df   :  { %3039 = vsyncadd [#allocation5], 4294967280 }
 0x9e0   :  { %2141 = vsyncpa [#allocation5], 1 }

</bundles_post_ra>
